<compile_context>
chip_gen: v7x
topology: tpu7x:2x2x1
jax: 0.10.0
libtpu: 0.0.40
codegen_flags: <defaults>
</compile_context>

<pallas_src>
import functools

import jax
import jax.numpy as jnp
from jax.experimental import pallas as pl
from jax.experimental.pallas import tpu as pltpu


def _rup(x, m):
    return ((x + m - 1) // m) * m


# -----------------------------------------------------------------------------
# Kernel: T teacher-forced decode steps in one pallas_call, grid = (T,).
# -----------------------------------------------------------------------------
def decoder_kernel(d, emb_ref, h0_ref, enc_ref, attn_ref, gru_ref, fc_ref,
                   pred_ref, hlast_ref, h_carry, enc_proj):
    t = pl.program_id(0)
    dec_p = d["dec_p"]
    S = enc_ref.shape[0]
    f32 = jnp.float32

    # ---- static, sublane-aligned views into the packed bf16 weight slabs ----
    wah = attn_ref[d["a_wah"]:d["a_wah"] + dec_p, :]                 # [dec_p, dec_p]
    ba = attn_ref[d["a_ba"]:d["a_ba"] + 1, :].astype(f32)            # [1, dec_p]
    v = attn_ref[d["a_v"]:d["a_v"] + 1, :].astype(f32)               # [1, dec_p]

    wih_e = gru_ref[d["g_we"]:d["g_we"] + d["emb_p"], :]             # [emb_p, 3*dec_p]
    wih_w = gru_ref[d["g_ww"]:d["g_ww"] + d["e2_p"], :]              # [e2_p, 3*dec_p]
    whh = gru_ref[d["g_wh"]:d["g_wh"] + dec_p, :]                    # [dec_p, 3*dec_p]
    b_ih = gru_ref[d["g_bi"]:d["g_bi"] + 1, :].astype(f32)           # [1, 3*dec_p]
    b_hh = gru_ref[d["g_bh"]:d["g_bh"] + 1, :].astype(f32)           # [1, 3*dec_p]

    wfc_h = fc_ref[d["f_wh"]:d["f_wh"] + dec_p, :]                   # [dec_p, out_p]
    wfc_w = fc_ref[d["f_ww"]:d["f_ww"] + d["e2_p"], :]               # [e2_p, out_p]
    wfc_e = fc_ref[d["f_we"]:d["f_we"] + d["emb_p"], :]              # [emb_p, out_p]
    b_fc = fc_ref[d["f_b"]:d["f_b"] + 1, :].astype(f32)              # [1, out_p]

    # ---- one-time init: hidden carry + loop-invariant encoder projection ----
    @pl.when(t == 0)
    def _():
        h_carry[...] = h0_ref[...]
        wae = attn_ref[d["a_wae"]:d["a_wae"] + d["e2_p"], :]         # [e2_p, dec_p]
        for s in range(S):                                           # static unroll, once per sequence
            enc_proj[s] = jnp.dot(enc_ref[s], wae, preferred_element_type=f32)

    h = h_carry[...]                                                 # [Bp, dec_p] f32
    h_b = h.astype(jnp.bfloat16)
    emb = emb_ref[0]                                                 # [Bp, emb_p] bf16

    # ---------------- Bahdanau attention (softmax over S) ----------------
    hid_part = jnp.dot(h_b, wah, preferred_element_type=f32)         # [Bp, dec_p]
    energy = jnp.tanh(enc_proj[...] + hid_part + ba)                 # [S, Bp, dec_p]
    scores = jnp.sum(energy * v, axis=2, keepdims=True)              # [S, Bp, 1]
    scores = scores - jnp.max(scores, axis=0, keepdims=True)
    p = jnp.exp(scores)
    a = p * pl.reciprocal(jnp.sum(p, axis=0, keepdims=True), approx=True)
    weighted = jnp.sum(a * enc_ref[...].astype(f32), axis=0)         # [Bp, e2_p]
    w_b = weighted.astype(jnp.bfloat16)

    # ------- GRU cell (PyTorch gate order r, z, n; 128-aligned gate cols) -------
    gi = (jnp.dot(emb, wih_e, preferred_element_type=f32)
          + jnp.dot(w_b, wih_w, preferred_element_type=f32) + b_ih)  # [Bp, 3*dec_p]
    gh = jnp.dot(h_b, whh, preferred_element_type=f32) + b_hh        # [Bp, 3*dec_p]
    r = jax.nn.sigmoid(gi[:, :dec_p] + gh[:, :dec_p])
    z = jax.nn.sigmoid(gi[:, dec_p:2 * dec_p] + gh[:, dec_p:2 * dec_p])
    n = jnp.tanh(gi[:, 2 * dec_p:] + r * gh[:, 2 * dec_p:])
    h_new = (1.0 - z) * n + z * h                                    # [Bp, dec_p]

    # ----------- output projection (split weights, no lane concat) -----------
    pred = (jnp.dot(h_new.astype(jnp.bfloat16), wfc_h, preferred_element_type=f32)
            + jnp.dot(w_b, wfc_w, preferred_element_type=f32)
            + jnp.dot(emb, wfc_e, preferred_element_type=f32)
            + b_fc)                                                  # [Bp, out_p]

    pred_ref[0] = pred
    h_carry[...] = h_new

    @pl.when(t == pl.num_programs(0) - 1)
    def _():
        hlast_ref[...] = h_new


# -----------------------------------------------------------------------------
# One-time weight packing (hoisted out of the decode loop).
# -----------------------------------------------------------------------------
def prepare_params(params):
    """Pack all decoder weights into three pre-transposed, padded bf16 slabs.

    * every block starts at a 16-row (bf16 sublane) aligned offset;
    * dec and out are zero-padded to multiples of 128 lanes;
    * GRU gates are scattered to 128-aligned column blocks (r|z|n at g*dec_p).
    """
    dec = params["attn_b"].shape[0]
    e2 = params["attn_w"].shape[1] - dec
    emb = params["embedding"].shape[1]
    out = params["fc_w"].shape[0]

    SUB = 16
    dec_p = _rup(dec, 128)
    out_p = _rup(out, 128)
    e2_p = _rup(e2, SUB)
    emb_p = _rup(emb, SUB)

    def gates(w_t):  # [k, 3*dec] -> [k, 3*dec_p], gate g placed at column g*dec_p
        g_out = jnp.zeros((w_t.shape[0], 3 * dec_p), jnp.float32)
        for g in range(3):
            g_out = g_out.at[:, g * dec_p:g * dec_p + dec].set(w_t[:, g * dec:(g + 1) * dec])
        return g_out

    # -- attention slab: [Wa_h^T | Wa_e^T | b_a | v], columns = dec_p --
    wa = params["attn_w"]                                   # [dec, dec + e2]
    a_wah, a_wae = 0, dec_p
    a_ba = a_wae + e2_p
    a_v = a_ba + SUB
    attn_slab = jnp.zeros((a_v + SUB, dec_p), jnp.float32)
    attn_slab = attn_slab.at[a_wah:a_wah + dec, :dec].set(wa[:, :dec].T)
    attn_slab = attn_slab.at[a_wae:a_wae + e2, :dec].set(wa[:, dec:].T)
    attn_slab = attn_slab.at[a_ba, :dec].set(params["attn_b"])
    attn_slab = attn_slab.at[a_v, :dec].set(params["v_w"][0])

    # -- GRU slab: [Wih_emb^T | Wih_ctx^T | Whh^T | b_ih | b_hh], columns = 3*dec_p --
    w_ih = params["w_ih"]                                   # [3*dec, emb + e2]
    g_we, g_ww = 0, emb_p
    g_wh = g_ww + e2_p
    g_bi = g_wh + dec_p
    g_bh = g_bi + SUB
    gru_slab = jnp.zeros((g_bh + SUB, 3 * dec_p), jnp.float32)
    gru_slab = gru_slab.at[g_we:g_we + emb, :].set(gates(w_ih[:, :emb].T))
    gru_slab = gru_slab.at[g_ww:g_ww + e2, :].set(gates(w_ih[:, emb:].T))
    gru_slab = gru_slab.at[g_wh:g_wh + dec, :].set(gates(params["w_hh"].T))
    gru_slab = gru_slab.at[g_bi, :].set(gates(params["b_ih"][None, :])[0])
    gru_slab = gru_slab.at[g_bh, :].set(gates(params["b_hh"][None, :])[0])

    # -- fc slab: [Wfc_h^T | Wfc_ctx^T | Wfc_emb^T | b_fc], columns = out_p --
    wfc = params["fc_w"]                                    # [out, dec + e2 + emb]
    f_wh, f_ww = 0, dec_p
    f_we = f_ww + e2_p
    f_b = f_we + emb_p
    fc_slab = jnp.zeros((f_b + SUB, out_p), jnp.float32)
    fc_slab = fc_slab.at[f_wh:f_wh + dec, :out].set(wfc[:, :dec].T)
    fc_slab = fc_slab.at[f_ww:f_ww + e2, :out].set(wfc[:, dec:dec + e2].T)
    fc_slab = fc_slab.at[f_we:f_we + emb, :out].set(wfc[:, dec + e2:].T)
    fc_slab = fc_slab.at[f_b, :out].set(params["fc_b"])

    dims = dict(dec=dec, e2=e2, emb=emb, out=out,
                dec_p=dec_p, e2_p=e2_p, emb_p=emb_p, out_p=out_p,
                a_wah=a_wah, a_wae=a_wae, a_ba=a_ba, a_v=a_v,
                g_we=g_we, g_ww=g_ww, g_wh=g_wh, g_bi=g_bi, g_bh=g_bh,
                f_wh=f_wh, f_ww=f_ww, f_we=f_we, f_b=f_b)

    return {"embedding": params["embedding"],
            "attn_slab": attn_slab.astype(jnp.bfloat16),
            "gru_slab": gru_slab.astype(jnp.bfloat16),
            "fc_slab": fc_slab.astype(jnp.bfloat16),
            "dims": dims}


# -----------------------------------------------------------------------------
# Wrappers
# -----------------------------------------------------------------------------
def decoder_decode(prepped, tokens, hidden, encoder_outputs):
    """Run T teacher-forced decode steps inside one Pallas kernel.

    tokens:          [T, B] int32 per-step decoder input token ids
    hidden:          [B, dec] initial decoder hidden state
    encoder_outputs: [S, B, 2*enc_hid]  (PyTorch seq-major layout)
    returns (predictions [T, B, out], final hidden [B, dec])
    """
    d = prepped["dims"]
    T, B = tokens.shape
    S = encoder_outputs.shape[0]
    Bp = _rup(max(B, 8), 8)

    # glue hoisted out of the decode loop: embedding gather (dropout is identity
    # in eval mode), zero-padding to TPU-friendly shapes, bf16 cast of activations.
    emb_all = prepped["embedding"][tokens.reshape(-1)].reshape(T, B, d["emb"])
    emb_pad = jnp.zeros((T, Bp, d["emb_p"]), jnp.bfloat16)
    emb_pad = emb_pad.at[:, :B, :d["emb"]].set(emb_all.astype(jnp.bfloat16))
    h0_pad = jnp.zeros((Bp, d["dec_p"]), jnp.float32).at[:B, :d["dec"]].set(hidden)
    enc_pad = jnp.zeros((S, Bp, d["e2_p"]), jnp.bfloat16)
    enc_pad = enc_pad.at[:, :B, :d["e2"]].set(encoder_outputs.astype(jnp.bfloat16))

    attn_slab = prepped["attn_slab"]
    gru_slab = prepped["gru_slab"]
    fc_slab = prepped["fc_slab"]

    grid_spec = pltpu.PrefetchScalarGridSpec(
        num_scalar_prefetch=0,
        grid=(T,),
        in_specs=[
            pl.BlockSpec((1, Bp, d["emb_p"]), lambda t: (t, 0, 0)),   # per-step embeddings
            pl.BlockSpec(h0_pad.shape, lambda t: (0, 0)),             # initial hidden (resident)
            pl.BlockSpec(enc_pad.shape, lambda t: (0, 0, 0)),         # encoder outputs (resident)
            pl.BlockSpec(attn_slab.shape, lambda t: (0, 0)),          # weight slabs (resident)
            pl.BlockSpec(gru_slab.shape, lambda t: (0, 0)),
            pl.BlockSpec(fc_slab.shape, lambda t: (0, 0)),
        ],
        out_specs=[
            pl.BlockSpec((1, Bp, d["out_p"]), lambda t: (t, 0, 0)),   # per-step logits (lane dense)
            pl.BlockSpec((Bp, d["dec_p"]), lambda t: (0, 0)),         # final hidden
        ],
        scratch_shapes=[
            pltpu.VMEM((Bp, d["dec_p"]), jnp.float32),                # recurrent hidden carry
            pltpu.VMEM((S, Bp, d["dec_p"]), jnp.float32),             # enc @ Wa_e (loop-invariant)
        ],
    )

    preds, h_last = pl.pallas_call(
        functools.partial(decoder_kernel, d),
        out_shape=(jax.ShapeDtypeStruct((T, Bp, d["out_p"]), jnp.float32),
                   jax.ShapeDtypeStruct((Bp, d["dec_p"]), jnp.float32)),
        grid_spec=grid_spec,
        input_output_aliases={1: 1},   # h0 buffer reused for the final hidden
        compiler_params=pltpu.CompilerParams(
            dimension_semantics=("arbitrary",)),   # recurrence over decode steps
    )(emb_pad, h0_pad, enc_pad, attn_slab, gru_slab, fc_slab)

    return preds[:, :B, :d["out"]], h_last[:B, :d["dec"]]


def decoder_forward(prepped, input_tokens, hidden, encoder_outputs):
    """Single decoder step with the original module's signature."""
    preds, h_new = decoder_decode(prepped, input_tokens[None, :], hidden, encoder_outputs)
    return preds[0], h_new


# -----------------------------------------------------------------------------
# Pure-JAX reference (mirrors the PyTorch forward in f32, eval mode)
# -----------------------------------------------------------------------------
def reference_forward(params, input_tokens, hidden, encoder_outputs):
    embedded = params["embedding"][input_tokens]              # [B, emb]
    S = encoder_outputs.shape[0]
    enc_bm = jnp.transpose(encoder_outputs, (1, 0, 2))        # [B, S, E2]
    hid_rep = jnp.repeat(hidden[:, None, :], S, axis=1)
    cat = jnp.concatenate([hid_rep, enc_bm], axis=2)
    energy = jnp.tanh(cat @ params["attn_w"].T + params["attn_b"])
    scores = jnp.squeeze(energy @ params["v_w"].T, axis=2)
    a = jax.nn.softmax(scores, axis=1)
    weighted = jnp.einsum("bs,bse->be", a, enc_bm)
    x = jnp.concatenate([embedded, weighted], axis=1)
    gi = x @ params["w_ih"].T + params["b_ih"]
    gh = hidden @ params["w_hh"].T + params["b_hh"]
    ir, iz, inn = jnp.split(gi, 3, axis=1)
    hr, hz, hn = jnp.split(gh, 3, axis=1)
    r = jax.nn.sigmoid(ir + hr)
    z = jax.nn.sigmoid(iz + hz)
    n = jnp.tanh(inn + r * hn)
    h_new = (1.0 - z) * n + z * hidden
    fc_in = jnp.concatenate([h_new, weighted, embedded], axis=1)
    pred = fc_in @ params["fc_w"].T + params["fc_b"]
    return pred, h_new


def reference_decode(params, tokens, hidden, encoder_outputs):
    preds = []
    h = hidden
    for t in range(tokens.shape[0]):
        p, h = reference_forward(params, tokens[t], h, encoder_outputs)
        preds.append(p)
    return jnp.stack(preds, axis=0), h


def make_params(key, output_dim, emb_dim, enc_hid_dim, dec_hid_dim):
    e2 = enc_hid_dim * 2
    ks = jax.random.split(key, 10)
    s = 0.1
    return {
        "embedding": s * jax.random.normal(ks[0], (output_dim, emb_dim), jnp.float32),
        "attn_w": s * jax.random.normal(ks[1], (dec_hid_dim, e2 + dec_hid_dim), jnp.float32),
        "attn_b": s * jax.random.normal(ks[2], (dec_hid_dim,), jnp.float32),
        "v_w": s * jax.random.normal(ks[3], (1, dec_hid_dim), jnp.float32),
        "w_ih": s * jax.random.normal(ks[4], (3 * dec_hid_dim, e2 + emb_dim), jnp.float32),
        "w_hh": s * jax.random.normal(ks[5], (3 * dec_hid_dim, dec_hid_dim), jnp.float32),
        "b_ih": s * jax.random.normal(ks[6], (3 * dec_hid_dim,), jnp.float32),
        "b_hh": s * jax.random.normal(ks[7], (3 * dec_hid_dim,), jnp.float32),
        "fc_w": s * jax.random.normal(ks[8], (output_dim, e2 + dec_hid_dim + emb_dim), jnp.float32),
        "fc_b": s * jax.random.normal(ks[9], (output_dim,), jnp.float32),
    }


if __name__ == "__main__":
    output_dim, emb_dim, enc_hid_dim, dec_hid_dim = 48, 16, 16, 32
    batch, src_len, steps = 4, 8, 4

    key = jax.random.PRNGKey(0)
    kp, k1, k2, k3 = jax.random.split(key, 4)
    params = make_params(kp, output_dim, emb_dim, enc_hid_dim, dec_hid_dim)
    prepped = prepare_params(params)          # one-time weight packing

    tokens = jax.random.randint(k1, (steps, batch), 0, output_dim, dtype=jnp.int32)
    hidden = jax.random.normal(k2, (batch, dec_hid_dim), jnp.float32)
    encoder_outputs = jax.random.normal(k3, (src_len, batch, enc_hid_dim * 2), jnp.float32)

    # Multi-step teacher-forced decode: one pallas_call, weights resident across steps.
    preds, h_last = decoder_decode(prepped, tokens, hidden, encoder_outputs)
    preds = jax.block_until_ready(preds)
    h_last = jax.block_until_ready(h_last)

    preds_ref, h_ref = reference_decode(params, tokens, hidden, encoder_outputs)
    assert preds.shape == (steps, batch, output_dim)
    assert h_last.shape == (batch, dec_hid_dim)
    # tolerance accounts for bf16 weights/activations + approx reciprocal
    assert jnp.allclose(preds, preds_ref, atol=2e-2, rtol=2e-2), \
        float(jnp.max(jnp.abs(preds - preds_ref)))
    assert jnp.allclose(h_last, h_ref, atol=2e-2, rtol=2e-2), \
        float(jnp.max(jnp.abs(h_last - h_ref)))

    # Single-step call with the original module API (T == 1 path).
    p1, h1 = decoder_forward(prepped, tokens[0], hidden, encoder_outputs)
    p1 = jax.block_until_ready(p1)
    p1_ref, h1_ref = reference_forward(params, tokens[0], hidden, encoder_outputs)
    assert jnp.allclose(p1, p1_ref, atol=2e-2, rtol=2e-2)
    assert jnp.allclose(h1, h1_ref, atol=2e-2, rtol=2e-2)

    print("KERNEL_OK")
</pallas_src>

<mosaic_0001>
module attributes {stable_mosaic.version = 11 : i64} {
  func.func @decoder_kernel(%arg0: i32, %arg1: memref<1x8x16xbf16, #tpu.memory_space<vmem>>, %arg2: memref<8x128xf32, #tpu.memory_space<vmem>>, %arg3: memref<8x8x32xbf16, #tpu.memory_space<vmem>>, %arg4: memref<192x128xbf16, #tpu.memory_space<vmem>>, %arg5: memref<208x384xbf16, #tpu.memory_space<vmem>>, %arg6: memref<192x128xbf16, #tpu.memory_space<vmem>>, %arg7: memref<1x8x128xf32, #tpu.memory_space<vmem>>, %arg8: memref<8x128xf32, #tpu.memory_space<vmem>>, %arg9: memref<8x128xf32, #tpu.memory_space<vmem>>, %arg10: memref<8x8x128xf32, #tpu.memory_space<vmem>>) attributes {dimension_semantics = [#tpu.dimension_semantics<arbitrary>], iteration_bounds = array<i64: 4>, scalar_prefetch = 0 : i64, scratch_operands = 2 : i64, tpu.core_type = #tpu.core_type<tc>, window_params = [{transform_indices = @transform_0, window_bounds = array<i64: 1, 8, 16>}, {pipeline_mode = #tpu.pipeline_mode<synchronous>, transform_indices = @transform_1, window_bounds = array<i64: 8, 128>}, {pipeline_mode = #tpu.pipeline_mode<synchronous>, transform_indices = @transform_2, window_bounds = array<i64: 8, 8, 32>}, {pipeline_mode = #tpu.pipeline_mode<synchronous>, transform_indices = @transform_3, window_bounds = array<i64: 192, 128>}, {pipeline_mode = #tpu.pipeline_mode<synchronous>, transform_indices = @transform_4, window_bounds = array<i64: 208, 384>}, {pipeline_mode = #tpu.pipeline_mode<synchronous>, transform_indices = @transform_5, window_bounds = array<i64: 192, 128>}, {transform_indices = @transform_6, window_bounds = array<i64: 1, 8, 128>}, {pipeline_mode = #tpu.pipeline_mode<synchronous>, transform_indices = @transform_7, window_bounds = array<i64: 8, 128>}]} {
    %c0 = arith.constant 0 : index
    %c0_0 = arith.constant 0 : index
    %0 = vector.load %arg4[%c0, %c0_0] : memref<192x128xbf16, #tpu.memory_space<vmem>>, vector<128x128xbf16>
    %c160 = arith.constant 160 : index
    %c0_1 = arith.constant 0 : index
    %1 = vector.load %arg4[%c160, %c0_1] : memref<192x128xbf16, #tpu.memory_space<vmem>>, vector<1x128xbf16>
    %2 = arith.extf %1 : vector<1x128xbf16> to vector<1x128xf32>
    %c176 = arith.constant 176 : index
    %c0_2 = arith.constant 0 : index
    %3 = vector.load %arg4[%c176, %c0_2] : memref<192x128xbf16, #tpu.memory_space<vmem>>, vector<1x128xbf16>
    %4 = arith.extf %3 : vector<1x128xbf16> to vector<1x128xf32>
    %c0_3 = arith.constant 0 : index
    %c0_4 = arith.constant 0 : index
    %5 = vector.load %arg5[%c0_3, %c0_4] : memref<208x384xbf16, #tpu.memory_space<vmem>>, vector<16x384xbf16>
    %c16 = arith.constant 16 : index
    %c0_5 = arith.constant 0 : index
    %6 = vector.load %arg5[%c16, %c0_5] : memref<208x384xbf16, #tpu.memory_space<vmem>>, vector<32x384xbf16>
    %c48 = arith.constant 48 : index
    %c0_6 = arith.constant 0 : index
    %7 = vector.load %arg5[%c48, %c0_6] : memref<208x384xbf16, #tpu.memory_space<vmem>>, vector<128x384xbf16>
    %c176_7 = arith.constant 176 : index
    %c0_8 = arith.constant 0 : index
    %8 = vector.load %arg5[%c176_7, %c0_8] : memref<208x384xbf16, #tpu.memory_space<vmem>>, vector<1x384xbf16>
    %9 = arith.extf %8 : vector<1x384xbf16> to vector<1x384xf32>
    %c192 = arith.constant 192 : index
    %c0_9 = arith.constant 0 : index
    %10 = vector.load %arg5[%c192, %c0_9] : memref<208x384xbf16, #tpu.memory_space<vmem>>, vector<1x384xbf16>
    %11 = arith.extf %10 : vector<1x384xbf16> to vector<1x384xf32>
    %c0_10 = arith.constant 0 : index
    %c0_11 = arith.constant 0 : index
    %12 = vector.load %arg6[%c0_10, %c0_11] : memref<192x128xbf16, #tpu.memory_space<vmem>>, vector<128x128xbf16>
    %c128 = arith.constant 128 : index
    %c0_12 = arith.constant 0 : index
    %13 = vector.load %arg6[%c128, %c0_12] : memref<192x128xbf16, #tpu.memory_space<vmem>>, vector<32x128xbf16>
    %c160_13 = arith.constant 160 : index
    %c0_14 = arith.constant 0 : index
    %14 = vector.load %arg6[%c160_13, %c0_14] : memref<192x128xbf16, #tpu.memory_space<vmem>>, vector<16x128xbf16>
    %c176_15 = arith.constant 176 : index
    %c0_16 = arith.constant 0 : index
    %15 = vector.load %arg6[%c176_15, %c0_16] : memref<192x128xbf16, #tpu.memory_space<vmem>>, vector<1x128xbf16>
    %16 = arith.extf %15 : vector<1x128xbf16> to vector<1x128xf32>
    %c0_i32 = arith.constant 0 : i32
    %17 = arith.cmpi eq, %arg0, %c0_i32 : i32
    %18 = arith.extui %17 : i1 to i32
    %c0_i32_17 = arith.constant 0 : i32
    %19 = arith.cmpi ne, %18, %c0_i32_17 : i32
    scf.if %19 {
      %c0_48 = arith.constant 0 : index
      %c0_49 = arith.constant 0 : index
      %103 = vector.load %arg2[%c0_48, %c0_49] : memref<8x128xf32, #tpu.memory_space<vmem>>, vector<8x128xf32>
      %c0_50 = arith.constant 0 : index
      %c0_51 = arith.constant 0 : index
      %104 = vector.load %arg9[%c0_50, %c0_51] : memref<8x128xf32, #tpu.memory_space<vmem>>, vector<8x128xf32>
      tpu.vector_store %arg9[%c0_50, %c0_51], %103 {strides = array<i32>} : memref<8x128xf32, #tpu.memory_space<vmem>>, vector<8x128xf32>,
      %c128_52 = arith.constant 128 : index
      %c0_53 = arith.constant 0 : index
      %105 = vector.load %arg4[%c128_52, %c0_53] : memref<192x128xbf16, #tpu.memory_space<vmem>>, vector<32x128xbf16>
      %c0_54 = arith.constant 0 : index
      %c0_55 = arith.constant 0 : index
      %c0_56 = arith.constant 0 : index
      %106 = vector.load %arg3[%c0_54, %c0_55, %c0_56] : memref<8x8x32xbf16, #tpu.memory_space<vmem>>, vector<1x8x32xbf16>
      %107 = vector.shape_cast %106 : vector<1x8x32xbf16> to vector<8x32xbf16>
      %cst_57 = arith.constant dense<0.000000e+00> : vector<8x128xf32>
      %108 = tpu.matmul %107, %105, %cst_57 {dimension_numbers = #tpu.dot_dimension_numbers<[1], [0], [0], [1], [0, 0, 1, 1], [], []>} : vector<8x32xbf16>, vector<32x128xbf16>, vector<8x128xf32> -> vector<8x128xf32>
      %c0_58 = arith.constant 0 : index
      %c0_59 = arith.constant 0 : index
      %c0_60 = arith.constant 0 : index
      %109 = vector.load %arg10[%c0_58, %c0_59, %c0_60] : memref<8x8x128xf32, #tpu.memory_space<vmem>>, vector<1x8x128xf32>
      %110 = vector.shape_cast %109 : vector<1x8x128xf32> to vector<8x128xf32>
      %111 = vector.shape_cast %108 : vector<8x128xf32> to vector<1x8x128xf32>
      tpu.vector_store %arg10[%c0_58, %c0_59, %c0_60], %111 {strides = array<i32>} : memref<8x8x128xf32, #tpu.memory_space<vmem>>, vector<1x8x128xf32>,
      %c1 = arith.constant 1 : index
      %c0_61 = arith.constant 0 : index
      %c0_62 = arith.constant 0 : index
      %112 = vector.load %arg3[%c1, %c0_61, %c0_62] : memref<8x8x32xbf16, #tpu.memory_space<vmem>>, vector<1x8x32xbf16>
      %113 = vector.shape_cast %112 : vector<1x8x32xbf16> to vector<8x32xbf16>
      %cst_63 = arith.constant dense<0.000000e+00> : vector<8x128xf32>
      %114 = tpu.matmul %113, %105, %cst_63 {dimension_numbers = #tpu.dot_dimension_numbers<[1], [0], [0], [1], [0, 0, 1, 1], [], []>} : vector<8x32xbf16>, vector<32x128xbf16>, vector<8x128xf32> -> vector<8x128xf32>
      %c1_64 = arith.constant 1 : index
      %c0_65 = arith.constant 0 : index
      %c0_66 = arith.constant 0 : index
      %115 = vector.load %arg10[%c1_64, %c0_65, %c0_66] : memref<8x8x128xf32, #tpu.memory_space<vmem>>, vector<1x8x128xf32>
      %116 = vector.shape_cast %115 : vector<1x8x128xf32> to vector<8x128xf32>
      %117 = vector.shape_cast %114 : vector<8x128xf32> to vector<1x8x128xf32>
      tpu.vector_store %arg10[%c1_64, %c0_65, %c0_66], %117 {strides = array<i32>} : memref<8x8x128xf32, #tpu.memory_space<vmem>>, vector<1x8x128xf32>,
      %c2 = arith.constant 2 : index
      %c0_67 = arith.constant 0 : index
      %c0_68 = arith.constant 0 : index
      %118 = vector.load %arg3[%c2, %c0_67, %c0_68] : memref<8x8x32xbf16, #tpu.memory_space<vmem>>, vector<1x8x32xbf16>
      %119 = vector.shape_cast %118 : vector<1x8x32xbf16> to vector<8x32xbf16>
      %cst_69 = arith.constant dense<0.000000e+00> : vector<8x128xf32>
      %120 = tpu.matmul %119, %105, %cst_69 {dimension_numbers = #tpu.dot_dimension_numbers<[1], [0], [0], [1], [0, 0, 1, 1], [], []>} : vector<8x32xbf16>, vector<32x128xbf16>, vector<8x128xf32> -> vector<8x128xf32>
      %c2_70 = arith.constant 2 : index
      %c0_71 = arith.constant 0 : index
      %c0_72 = arith.constant 0 : index
      %121 = vector.load %arg10[%c2_70, %c0_71, %c0_72] : memref<8x8x128xf32, #tpu.memory_space<vmem>>, vector<1x8x128xf32>
      %122 = vector.shape_cast %121 : vector<1x8x128xf32> to vector<8x128xf32>
      %123 = vector.shape_cast %120 : vector<8x128xf32> to vector<1x8x128xf32>
      tpu.vector_store %arg10[%c2_70, %c0_71, %c0_72], %123 {strides = array<i32>} : memref<8x8x128xf32, #tpu.memory_space<vmem>>, vector<1x8x128xf32>,
      %c3 = arith.constant 3 : index
      %c0_73 = arith.constant 0 : index
      %c0_74 = arith.constant 0 : index
      %124 = vector.load %arg3[%c3, %c0_73, %c0_74] : memref<8x8x32xbf16, #tpu.memory_space<vmem>>, vector<1x8x32xbf16>
      %125 = vector.shape_cast %124 : vector<1x8x32xbf16> to vector<8x32xbf16>
      %cst_75 = arith.constant dense<0.000000e+00> : vector<8x128xf32>
      %126 = tpu.matmul %125, %105, %cst_75 {dimension_numbers = #tpu.dot_dimension_numbers<[1], [0], [0], [1], [0, 0, 1, 1], [], []>} : vector<8x32xbf16>, vector<32x128xbf16>, vector<8x128xf32> -> vector<8x128xf32>
      %c3_76 = arith.constant 3 : index
      %c0_77 = arith.constant 0 : index
      %c0_78 = arith.constant 0 : index
      %127 = vector.load %arg10[%c3_76, %c0_77, %c0_78] : memref<8x8x128xf32, #tpu.memory_space<vmem>>, vector<1x8x128xf32>
      %128 = vector.shape_cast %127 : vector<1x8x128xf32> to vector<8x128xf32>
      %129 = vector.shape_cast %126 : vector<8x128xf32> to vector<1x8x128xf32>
      tpu.vector_store %arg10[%c3_76, %c0_77, %c0_78], %129 {strides = array<i32>} : memref<8x8x128xf32, #tpu.memory_space<vmem>>, vector<1x8x128xf32>,
      %c4 = arith.constant 4 : index
      %c0_79 = arith.constant 0 : index
      %c0_80 = arith.constant 0 : index
      %130 = vector.load %arg3[%c4, %c0_79, %c0_80] : memref<8x8x32xbf16, #tpu.memory_space<vmem>>, vector<1x8x32xbf16>
      %131 = vector.shape_cast %130 : vector<1x8x32xbf16> to vector<8x32xbf16>
      %cst_81 = arith.constant dense<0.000000e+00> : vector<8x128xf32>
      %132 = tpu.matmul %131, %105, %cst_81 {dimension_numbers = #tpu.dot_dimension_numbers<[1], [0], [0], [1], [0, 0, 1, 1], [], []>} : vector<8x32xbf16>, vector<32x128xbf16>, vector<8x128xf32> -> vector<8x128xf32>
      %c4_82 = arith.constant 4 : index
      %c0_83 = arith.constant 0 : index
      %c0_84 = arith.constant 0 : index
      %133 = vector.load %arg10[%c4_82, %c0_83, %c0_84] : memref<8x8x128xf32, #tpu.memory_space<vmem>>, vector<1x8x128xf32>
      %134 = vector.shape_cast %133 : vector<1x8x128xf32> to vector<8x128xf32>
      %135 = vector.shape_cast %132 : vector<8x128xf32> to vector<1x8x128xf32>
      tpu.vector_store %arg10[%c4_82, %c0_83, %c0_84], %135 {strides = array<i32>} : memref<8x8x128xf32, #tpu.memory_space<vmem>>, vector<1x8x128xf32>,
      %c5 = arith.constant 5 : index
      %c0_85 = arith.constant 0 : index
      %c0_86 = arith.constant 0 : index
      %136 = vector.load %arg3[%c5, %c0_85, %c0_86] : memref<8x8x32xbf16, #tpu.memory_space<vmem>>, vector<1x8x32xbf16>
      %137 = vector.shape_cast %136 : vector<1x8x32xbf16> to vector<8x32xbf16>
      %cst_87 = arith.constant dense<0.000000e+00> : vector<8x128xf32>
      %138 = tpu.matmul %137, %105, %cst_87 {dimension_numbers = #tpu.dot_dimension_numbers<[1], [0], [0], [1], [0, 0, 1, 1], [], []>} : vector<8x32xbf16>, vector<32x128xbf16>, vector<8x128xf32> -> vector<8x128xf32>
      %c5_88 = arith.constant 5 : index
      %c0_89 = arith.constant 0 : index
      %c0_90 = arith.constant 0 : index
      %139 = vector.load %arg10[%c5_88, %c0_89, %c0_90] : memref<8x8x128xf32, #tpu.memory_space<vmem>>, vector<1x8x128xf32>
      %140 = vector.shape_cast %139 : vector<1x8x128xf32> to vector<8x128xf32>
      %141 = vector.shape_cast %138 : vector<8x128xf32> to vector<1x8x128xf32>
      tpu.vector_store %arg10[%c5_88, %c0_89, %c0_90], %141 {strides = array<i32>} : memref<8x8x128xf32, #tpu.memory_space<vmem>>, vector<1x8x128xf32>,
      %c6 = arith.constant 6 : index
      %c0_91 = arith.constant 0 : index
      %c0_92 = arith.constant 0 : index
      %142 = vector.load %arg3[%c6, %c0_91, %c0_92] : memref<8x8x32xbf16, #tpu.memory_space<vmem>>, vector<1x8x32xbf16>
      %143 = vector.shape_cast %142 : vector<1x8x32xbf16> to vector<8x32xbf16>
      %cst_93 = arith.constant dense<0.000000e+00> : vector<8x128xf32>
      %144 = tpu.matmul %143, %105, %cst_93 {dimension_numbers = #tpu.dot_dimension_numbers<[1], [0], [0], [1], [0, 0, 1, 1], [], []>} : vector<8x32xbf16>, vector<32x128xbf16>, vector<8x128xf32> -> vector<8x128xf32>
      %c6_94 = arith.constant 6 : index
      %c0_95 = arith.constant 0 : index
      %c0_96 = arith.constant 0 : index
      %145 = vector.load %arg10[%c6_94, %c0_95, %c0_96] : memref<8x8x128xf32, #tpu.memory_space<vmem>>, vector<1x8x128xf32>
      %146 = vector.shape_cast %145 : vector<1x8x128xf32> to vector<8x128xf32>
      %147 = vector.shape_cast %144 : vector<8x128xf32> to vector<1x8x128xf32>
      tpu.vector_store %arg10[%c6_94, %c0_95, %c0_96], %147 {strides = array<i32>} : memref<8x8x128xf32, #tpu.memory_space<vmem>>, vector<1x8x128xf32>,
      %c7 = arith.constant 7 : index
      %c0_97 = arith.constant 0 : index
      %c0_98 = arith.constant 0 : index
      %148 = vector.load %arg3[%c7, %c0_97, %c0_98] : memref<8x8x32xbf16, #tpu.memory_space<vmem>>, vector<1x8x32xbf16>
      %149 = vector.shape_cast %148 : vector<1x8x32xbf16> to vector<8x32xbf16>
      %cst_99 = arith.constant dense<0.000000e+00> : vector<8x128xf32>
      %150 = tpu.matmul %149, %105, %cst_99 {dimension_numbers = #tpu.dot_dimension_numbers<[1], [0], [0], [1], [0, 0, 1, 1], [], []>} : vector<8x32xbf16>, vector<32x128xbf16>, vector<8x128xf32> -> vector<8x128xf32>
      %c7_100 = arith.constant 7 : index
      %c0_101 = arith.constant 0 : index
      %c0_102 = arith.constant 0 : index
      %151 = vector.load %arg10[%c7_100, %c0_101, %c0_102] : memref<8x8x128xf32, #tpu.memory_space<vmem>>, vector<1x8x128xf32>
      %152 = vector.shape_cast %151 : vector<1x8x128xf32> to vector<8x128xf32>
      %153 = vector.shape_cast %150 : vector<8x128xf32> to vector<1x8x128xf32>
      tpu.vector_store %arg10[%c7_100, %c0_101, %c0_102], %153 {strides = array<i32>} : memref<8x8x128xf32, #tpu.memory_space<vmem>>, vector<1x8x128xf32>,
    } else {
    }
    %c0_18 = arith.constant 0 : index
    %c0_19 = arith.constant 0 : index
    %20 = vector.load %arg9[%c0_18, %c0_19] : memref<8x128xf32, #tpu.memory_space<vmem>>, vector<8x128xf32>
    %21 = arith.truncf %20 : vector<8x128xf32> to vector<8x128xbf16>
    %c0_20 = arith.constant 0 : index
    %c0_21 = arith.constant 0 : index
    %c0_22 = arith.constant 0 : index
    %22 = vector.load %arg1[%c0_20, %c0_21, %c0_22] : memref<1x8x16xbf16, #tpu.memory_space<vmem>>, vector<1x8x16xbf16>
    %23 = vector.shape_cast %22 : vector<1x8x16xbf16> to vector<8x16xbf16>
    %cst = arith.constant dense<0.000000e+00> : vector<8x128xf32>
    %24 = tpu.matmul %21, %0, %cst {dimension_numbers = #tpu.dot_dimension_numbers<[1], [0], [0], [1], [0, 0, 1, 1], [], []>} : vector<8x128xbf16>, vector<128x128xbf16>, vector<8x128xf32> -> vector<8x128xf32>
    %c0_23 = arith.constant 0 : index
    %c0_24 = arith.constant 0 : index
    %c0_25 = arith.constant 0 : index
    %25 = vector.load %arg10[%c0_23, %c0_24, %c0_25] : memref<8x8x128xf32, #tpu.memory_space<vmem>>, vector<8x8x128xf32>
    %26 = vector.shape_cast %24 : vector<8x128xf32> to vector<1x8x128xf32>
    %27 = vector.broadcast %26 : vector<1x8x128xf32> to vector<8x8x128xf32>
    %28 = arith.addf %25, %27 : vector<8x8x128xf32>
    %29 = vector.shape_cast %2 : vector<1x128xf32> to vector<1x1x128xf32>
    %30 = vector.broadcast %29 : vector<1x1x128xf32> to vector<8x8x128xf32>
    %31 = arith.addf %28, %30 : vector<8x8x128xf32>
    %32 = math.tanh %31 : vector<8x8x128xf32>
    %33 = vector.shape_cast %4 : vector<1x128xf32> to vector<1x1x128xf32>
    %34 = vector.broadcast %33 : vector<1x1x128xf32> to vector<8x8x128xf32>
    %35 = arith.mulf %32, %34 : vector<8x8x128xf32>
    %cst_26 = arith.constant dense<0.000000e+00> : vector<8x8xf32>
    %36 = vector.multi_reduction <add>, %35, %cst_26 [2] : vector<8x8x128xf32> to vector<8x8xf32>
    %37 = vector.shape_cast %36 : vector<8x8xf32> to vector<8x8x1xf32>
    %cst_27 = arith.constant dense<0xFF800000> : vector<8x1xf32>
    %38 = vector.multi_reduction <maximumf>, %37, %cst_27 [0] : vector<8x8x1xf32> to vector<8x1xf32>
    %39 = vector.shape_cast %38 : vector<8x1xf32> to vector<1x8x1xf32>
    %40 = vector.broadcast %39 : vector<1x8x1xf32> to vector<8x8x1xf32>
    %41 = arith.subf %37, %40 : vector<8x8x1xf32>
    %42 = math.exp %41 : vector<8x8x1xf32>
    %cst_28 = arith.constant dense<0.000000e+00> : vector<8x1xf32>
    %43 = vector.multi_reduction <add>, %42, %cst_28 [0] : vector<8x8x1xf32> to vector<8x1xf32>
    %44 = vector.shape_cast %43 : vector<8x1xf32> to vector<1x8x1xf32>
    %45 = tpu.reciprocal %44 {approx = true} : vector<1x8x1xf32> -> vector<1x8x1xf32>
    %46 = vector.broadcast %45 : vector<1x8x1xf32> to vector<8x8x1xf32>
    %47 = arith.mulf %42, %46 : vector<8x8x1xf32>
    %c0_29 = arith.constant 0 : index
    %c0_30 = arith.constant 0 : index
    %c0_31 = arith.constant 0 : index
    %48 = vector.load %arg3[%c0_29, %c0_30, %c0_31] : memref<8x8x32xbf16, #tpu.memory_space<vmem>>, vector<8x8x32xbf16>
    %49 = arith.extf %48 : vector<8x8x32xbf16> to vector<8x8x32xf32>
    %50 = vector.broadcast %47 : vector<8x8x1xf32> to vector<8x8x32xf32>
    %51 = arith.mulf %50, %49 : vector<8x8x32xf32>
    %cst_32 = arith.constant dense<0.000000e+00> : vector<8x32xf32>
    %52 = vector.multi_reduction <add>, %51, %cst_32 [0] : vector<8x8x32xf32> to vector<8x32xf32>
    %53 = arith.truncf %52 : vector<8x32xf32> to vector<8x32xbf16>
    %cst_33 = arith.constant dense<0.000000e+00> : vector<8x384xf32>
    %54 = tpu.matmul %23, %5, %cst_33 {dimension_numbers = #tpu.dot_dimension_numbers<[1], [0], [0], [1], [0, 0, 1, 1], [], []>} : vector<8x16xbf16>, vector<16x384xbf16>, vector<8x384xf32> -> vector<8x384xf32>
    %cst_34 = arith.constant dense<0.000000e+00> : vector<8x384xf32>
    %55 = tpu.matmul %53, %6, %cst_34 {dimension_numbers = #tpu.dot_dimension_numbers<[1], [0], [0], [1], [0, 0, 1, 1], [], []>} : vector<8x32xbf16>, vector<32x384xbf16>, vector<8x384xf32> -> vector<8x384xf32>
    %56 = arith.addf %54, %55 : vector<8x384xf32>
    %57 = vector.broadcast %9 : vector<1x384xf32> to vector<8x384xf32>
    %58 = arith.addf %56, %57 : vector<8x384xf32>
    %cst_35 = arith.constant dense<0.000000e+00> : vector<8x384xf32>
    %59 = tpu.matmul %21, %7, %cst_35 {dimension_numbers = #tpu.dot_dimension_numbers<[1], [0], [0], [1], [0, 0, 1, 1], [], []>} : vector<8x128xbf16>, vector<128x384xbf16>, vector<8x384xf32> -> vector<8x384xf32>
    %60 = vector.broadcast %11 : vector<1x384xf32> to vector<8x384xf32>
    %61 = arith.addf %59, %60 : vector<8x384xf32>
    %62 = vector.extract_strided_slice %58 {offsets = [0, 0], sizes = [8, 128], strides = [1, 1]} : vector<8x384xf32> to vector<8x128xf32>
    %63 = vector.extract_strided_slice %61 {offsets = [0, 0], sizes = [8, 128], strides = [1, 1]} : vector<8x384xf32> to vector<8x128xf32>
    %64 = arith.addf %62, %63 : vector<8x128xf32>
    %65 = arith.negf %64 : vector<8x128xf32>
    %66 = math.exp %65 : vector<8x128xf32>
    %cst_36 = arith.constant 1.000000e+00 : f32
    %67 = vector.broadcast %cst_36 : f32 to vector<8x128xf32>
    %68 = arith.addf %67, %66 : vector<8x128xf32>
    %69 = arith.divf %67, %68 : vector<8x128xf32>
    %70 = vector.extract_strided_slice %58 {offsets = [0, 128], sizes = [8, 128], strides = [1, 1]} : vector<8x384xf32> to vector<8x128xf32>
    %71 = vector.extract_strided_slice %61 {offsets = [0, 128], sizes = [8, 128], strides = [1, 1]} : vector<8x384xf32> to vector<8x128xf32>
    %72 = arith.addf %70, %71 : vector<8x128xf32>
    %73 = arith.negf %72 : vector<8x128xf32>
    %74 = math.exp %73 : vector<8x128xf32>
    %cst_37 = arith.constant 1.000000e+00 : f32
    %75 = vector.broadcast %cst_37 : f32 to vector<8x128xf32>
    %76 = arith.addf %75, %74 : vector<8x128xf32>
    %77 = arith.divf %75, %76 : vector<8x128xf32>
    %78 = vector.extract_strided_slice %58 {offsets = [0, 256], sizes = [8, 128], strides = [1, 1]} : vector<8x384xf32> to vector<8x128xf32>
    %79 = vector.extract_strided_slice %61 {offsets = [0, 256], sizes = [8, 128], strides = [1, 1]} : vector<8x384xf32> to vector<8x128xf32>
    %80 = arith.mulf %69, %79 : vector<8x128xf32>
    %81 = arith.addf %78, %80 : vector<8x128xf32>
    %82 = math.tanh %81 : vector<8x128xf32>
    %cst_38 = arith.constant 1.000000e+00 : f32
    %83 = vector.broadcast %cst_38 : f32 to vector<8x128xf32>
    %84 = arith.subf %83, %77 : vector<8x128xf32>
    %85 = arith.mulf %84, %82 : vector<8x128xf32>
    %86 = arith.mulf %77, %20 : vector<8x128xf32>
    %87 = arith.addf %85, %86 : vector<8x128xf32>
    %88 = arith.truncf %87 : vector<8x128xf32> to vector<8x128xbf16>
    %cst_39 = arith.constant dense<0.000000e+00> : vector<8x128xf32>
    %89 = tpu.matmul %88, %12, %cst_39 {dimension_numbers = #tpu.dot_dimension_numbers<[1], [0], [0], [1], [0, 0, 1, 1], [], []>} : vector<8x128xbf16>, vector<128x128xbf16>, vector<8x128xf32> -> vector<8x128xf32>
    %cst_40 = arith.constant dense<0.000000e+00> : vector<8x128xf32>
    %90 = tpu.matmul %53, %13, %cst_40 {dimension_numbers = #tpu.dot_dimension_numbers<[1], [0], [0], [1], [0, 0, 1, 1], [], []>} : vector<8x32xbf16>, vector<32x128xbf16>, vector<8x128xf32> -> vector<8x128xf32>
    %91 = arith.addf %89, %90 : vector<8x128xf32>
    %cst_41 = arith.constant dense<0.000000e+00> : vector<8x128xf32>
    %92 = tpu.matmul %23, %14, %cst_41 {dimension_numbers = #tpu.dot_dimension_numbers<[1], [0], [0], [1], [0, 0, 1, 1], [], []>} : vector<8x16xbf16>, vector<16x128xbf16>, vector<8x128xf32> -> vector<8x128xf32>
    %93 = arith.addf %91, %92 : vector<8x128xf32>
    %94 = vector.broadcast %16 : vector<1x128xf32> to vector<8x128xf32>
    %95 = arith.addf %93, %94 : vector<8x128xf32>
    %c0_42 = arith.constant 0 : index
    %c0_43 = arith.constant 0 : index
    %c0_44 = arith.constant 0 : index
    %96 = vector.load %arg7[%c0_42, %c0_43, %c0_44] : memref<1x8x128xf32, #tpu.memory_space<vmem>>, vector<1x8x128xf32>
    %97 = vector.shape_cast %96 : vector<1x8x128xf32> to vector<8x128xf32>
    %98 = vector.shape_cast %95 : vector<8x128xf32> to vector<1x8x128xf32>
    tpu.vector_store %arg7[%c0_42, %c0_43, %c0_44], %98 {strides = array<i32>} : memref<1x8x128xf32, #tpu.memory_space<vmem>>, vector<1x8x128xf32>,
    %c0_45 = arith.constant 0 : index
    %c0_46 = arith.constant 0 : index
    %99 = vector.load %arg9[%c0_45, %c0_46] : memref<8x128xf32, #tpu.memory_space<vmem>>, vector<8x128xf32>
    tpu.vector_store %arg9[%c0_45, %c0_46], %87 {strides = array<i32>} : memref<8x128xf32, #tpu.memory_space<vmem>>, vector<8x128xf32>,
    %c3_i32 = arith.constant 3 : i32
    %100 = arith.cmpi eq, %arg0, %c3_i32 : i32
    %101 = arith.extui %100 : i1 to i32
    %c0_i32_47 = arith.constant 0 : i32
    %102 = arith.cmpi ne, %101, %c0_i32_47 : i32
    scf.if %102 {
      %c0_48 = arith.constant 0 : index
      %c0_49 = arith.constant 0 : index
      %103 = vector.load %arg8[%c0_48, %c0_49] : memref<8x128xf32, #tpu.memory_space<vmem>>, vector<8x128xf32>
      tpu.vector_store %arg8[%c0_48, %c0_49], %87 {strides = array<i32>} : memref<8x128xf32, #tpu.memory_space<vmem>>, vector<8x128xf32>,
    } else {
    }
    return
  }
  func.func @transform_0(%arg0: i32) -> (i32, i32, i32) {
    %c0_i32 = arith.constant 0 : i32
    %c0_i32_0 = arith.constant 0 : i32
    %c0_i32_1 = arith.constant 0 : i32
    return %arg0, %c0_i32, %c0_i32_0 : i32, i32, i32
  }
  func.func @transform_1(%arg0: i32) -> (i32, i32) {
    %c0_i32 = arith.constant 0 : i32
    %c0_i32_0 = arith.constant 0 : i32
    %c0_i32_1 = arith.constant 0 : i32
    return %c0_i32, %c0_i32_0 : i32, i32
  }
  func.func @transform_2(%arg0: i32) -> (i32, i32, i32) {
    %c0_i32 = arith.constant 0 : i32
    %c0_i32_0 = arith.constant 0 : i32
    %c0_i32_1 = arith.constant 0 : i32
    %c0_i32_2 = arith.constant 0 : i32
    return %c0_i32, %c0_i32_0, %c0_i32_1 : i32, i32, i32
  }
  func.func @transform_3(%arg0: i32) -> (i32, i32) {
    %c0_i32 = arith.constant 0 : i32
    %c0_i32_0 = arith.constant 0 : i32
    %c0_i32_1 = arith.constant 0 : i32
    return %c0_i32, %c0_i32_0 : i32, i32
  }
  func.func @transform_4(%arg0: i32) -> (i32, i32) {
    %c0_i32 = arith.constant 0 : i32
    %c0_i32_0 = arith.constant 0 : i32
    %c0_i32_1 = arith.constant 0 : i32
    return %c0_i32, %c0_i32_0 : i32, i32
  }
  func.func @transform_5(%arg0: i32) -> (i32, i32) {
    %c0_i32 = arith.constant 0 : i32
    %c0_i32_0 = arith.constant 0 : i32
    %c0_i32_1 = arith.constant 0 : i32
    return %c0_i32, %c0_i32_0 : i32, i32
  }
  func.func @transform_6(%arg0: i32) -> (i32, i32, i32) {
    %c0_i32 = arith.constant 0 : i32
    %c0_i32_0 = arith.constant 0 : i32
    %c0_i32_1 = arith.constant 0 : i32
    return %arg0, %c0_i32, %c0_i32_0 : i32, i32, i32
  }
  func.func @transform_7(%arg0: i32) -> (i32, i32) {
    %c0_i32 = arith.constant 0 : i32
    %c0_i32_0 = arith.constant 0 : i32
    %c0_i32_1 = arith.constant 0 : i32
    return %c0_i32, %c0_i32_0 : i32, i32
  }
}

</mosaic_0001>

<bundles_post_ra>
// kernel: tpu_custom_call.1
= control target key start
LH: loop header
LB: loop body
LE: loop exit
PB: predicated region body
PF: predicated region fallthrough
CT: control target
= control target key end

     0   :  { %s3391_s0 = inlined_call_operand.vmem [shape: bf16[4,8,16], index: 0, kind: input, shape index: {}]   ;;  %s3392_s1 = inlined_call_operand.hbm [shape: f32[8,128], index: 1, kind: input, shape index: {}, may-alias: {1,7}]   ;;  %s3393_s2 = inlined_call_operand.hbm [shape: bf16[8,8,32], index: 2, kind: input, shape index: {}]   ;;  %s3394_s3 = inlined_call_operand.hbm [shape: bf16[192,128], index: 3, kind: input, shape index: {}]   ;;  %s3395_s4 = inlined_call_operand.hbm [shape: bf16[208,384], index: 4, kind: input, shape index: {}]   ;;  %s3396_s5 = inlined_call_operand.hbm [shape: bf16[192,128], index: 5, kind: input, shape index: {}]   ;;  %s3397_s6 = inlined_call_operand.hbm [shape: f32[4,8,128], index: 6, kind: output, shape index: {0}]   ;;  %s3398_s7 = inlined_call_operand.hbm [shape: f32[8,128], index: 7, kind: output, shape index: {1}, may-alias: {1,7}]  }
   0x1   :  { %3427 = sst [smem:[#allocation66_spill]] %s3393_s2 }
   0x2   :  { %13 = vsyncpa [#allocation5], 0 }
   0x3   :  { %14 = vsyncpa [#allocation8], 0 }
   0x4   :  { %15 = vsyncpa [#allocation11], 0 }
   0x5   :  { %16 = vsyncpa [#allocation6], 0 }
   0x6   :  { %18 = vsyncpa [#allocation6 + $0x1], 0 }
   0x7   :  { %19 = vsyncpa [#allocation15], 0  ;;  %s2692_s24 = smov 0   ;;  %s2694_s25 = smov 0  }
   0x8   :  { %s2696_s26 = smov 0   ;;  %s2698_s27 = smov 0  }
   0x9 LB: > { %3428 = sst [smem:[#allocation21_spill]] %s2630_s26  ;;  %s2713_s28 = sadd.s32 4294967295, %s2634_s27   ;;  %s2634_s27 = sphi %s2698_s27, %s3551_s27   ;;  %s2630_s26 = sphi %s2696_s26, %s3548_s26   ;;  %s2626_s25 = sphi %s2694_s25, %s3550_s25   ;;  %s2622_s24 = sphi %s2692_s24, %s3549_s24  }
   0xa   : > { %s1902_s29 = sadd.s32 4294967294, %s2634_s27   ;;  %s2717_s30 = sadd.s32 1, %s2634_s27  }
   0xb   : > { %s163_s8 = sadd.s32 1, %s2630_s26  ;;  %s160_s9 = ssub.s32 %s2634_s27, %s2717_s30 }
   0xc   : > { %p173_p0 = scmp.ne.s32.totalorder %s2630_s26, %s2626_s25  ;;  %p161_p1 = scmp.eq.s32.totalorder %s160_s9, 0 }
   0xd   : > { %p3399_p2 = scmp.eq.s32.totalorder %s2713_s28, 3  ;;  %p179_p3 = scmp.ne.s32.totalorder %s2626_s25, %s2622_s24 }
   0xe   : > { %p180_p4 = scmp.eq.s32.totalorder %s1902_s29, 3  ;;  %p1903_p7 = scmp.ge.s32.totalorder %s2634_s27, 1 }
   0xf   : > { %s2728_s10 = scalar_select %p161_p1, %s2630_s26, %s163_s8  }
  0x10   : > { %p2732_p5 = por %p3399_p2, %p173_p0  ;;  %p2736_p6 = por %p180_p4, %p179_p3 }
  0x11   : > { %3429 = sst [smem:[#allocation22_spill]] %s2728_s10  ;;  %p208_p8 = scmp.lt.s32.totalorder %s2634_s27, 5 }
  0x12   : > { %s3430_s11 = scalar_select %p2732_p5, 1, 0 }
  0x13   : > { %s3431_s12 = scalar_select %p2736_p6, 1, 0 }
  0x14   : > { %p3400_p10 = scmp.eq.s32.totalorder %s2713_s28, 0  ;;  %p2744_p11 = pnand %p1903_p7, %p208_p8 }
  0x15   : > { %s2636_s14 = smov [#allocation7]   ;;  %s2637_s17 = smov [#allocation10]  }
  0x16   : > { %s3432_s13 = scalar_select %p2744_p11, 1, 0 }
  0x17   : > { %s231_s15 = sshll.u32 %s2636_s14, 4  ;;  %p2264_p12 = pneg %p2744_p11  ;;  %s232_s15 = int_to_ptr.vmem [resolvable:$true] %s231_s15 }
  0x18   : > { %s257_s18 = sshll.u32 %s2637_s17, 4  ;;  %s3434_s2 = sld [smem:[#allocation66_spill]]  ;;  %s2756_s18 = int_to_ptr.vmem [resolvable:$true] %s257_s18 }
  0x19   : > { %p2752_p13 = pnand %p3400_p10, %p2264_p12 }
  0x1b   : > { %p2766_p1 = pneg %p2752_p13 }
  0x1e   : > { %s2390_s21 = scalar_lea.hbm %s3434_s2, 512 }
  0x1f   : > { %p2391_p0 = scmp.ne.s32.totalorder %s3434_s2, %s2390_s21  ;;  %p2397_p7 = scmp.lt.u32.totalorder %s2390_s21, %s3434_s2 }
  0x21   : > { %p2393_p3 = pnand %p2766_p1, %p2391_p0 }
  0x23   : > { %p2394_p4 = pneg %p2393_p3 }
  0x25   : > { %p2399_p8 = pnand %p2397_p7, %p2394_p4 }
  0x27   : > { %2402 = shalt.err (!%p2399_p8)
}
  0x28   : > { %s2403_s14 = scalar_lea.vmem %s232_s15, 512  ;;  %p2411_p10 = scmp.lt.s32.totalorder %s232_s15, %s232_s15 }
  0x29   : > { %p2404_p12 = scmp.ne.s32.totalorder %s232_s15, %s2403_s14  ;;  %p2412_p6 = scmp.lt.s32.totalorder %s2403_s14, %s2403_s14 }
  0x2b   : > { %p2406_p2 = pnand %p2404_p12, %p2766_p1  ;;  %p2413_p5 = por %p2412_p6, %p2411_p10 }
  0x2d   : > { %p2407_p9 = pneg %p2406_p2 }
  0x2f   : > { %p2414_p11 = pnand %p2413_p5, %p2407_p9 }
  0x31   : > { %2417 = shalt.err (!%p2414_p11)
}
  0x32   : > { %s3404_s17 = smov 64   ;;  %s3406_s19 = smov 4  }
  0x33   : > { %2270 = dma.hbm_to_vmem [thread:$0]  (!%p2752_p13), %s3434_s2, 512, %s232_s15, [#allocation8], %s3404_s17, %s3404_s17, %s3406_s19  }
  0x34   : > { %s2418_s8 = scalar_lea.hbm %s3395_s4, 4992 }
  0x35   : > { %p2419_p2 = scmp.ne.s32.totalorder %s3395_s4, %s2418_s8  ;;  %p2425_p9 = scmp.lt.u32.totalorder %s2418_s8, %s3395_s4 }
  0x37   : > { %p2421_p5 = pnand %p2419_p2, %p2766_p1 }
  0x39   : > { %p2422_p6 = pneg %p2421_p5 }
  0x3b   : > { %p2427_p10 = pnand %p2425_p9, %p2422_p6 }
  0x3d   : > { %2430 = shalt.err (!%p2427_p10)
}
  0x3e   : > { %s2431_s15 = scalar_lea.vmem %s2756_s18, 4992  ;;  %p2439_p4 = scmp.lt.s32.totalorder %s2756_s18, %s2756_s18 }
  0x3f   : > { %p2432_p11 = scmp.ne.s32.totalorder %s2756_s18, %s2431_s15  ;;  %p2440_p7 = scmp.lt.s32.totalorder %s2431_s15, %s2431_s15 }
  0x41   : > { %p2434_p0 = pnand %p2432_p11, %p2766_p1  ;;  %p2441_p8 = por %p2440_p7, %p2439_p4 }
  0x43   : > { %p2435_p3 = pneg %p2434_p0 }
  0x45   : > { %p2442_p12 = pnand %p2441_p8, %p2435_p3 }
  0x47   : > { %2445 = shalt.err (!%p2442_p12)
}
  0x48   : > { %s2640_s20 = smov 192   ;;  %s2641_s26 = smov 12  }
  0x49   : > { %2276 = dma.hbm_to_vmem [thread:$0]  (!%p2752_p13), %s3395_s4, 4992, %s2756_s18, [#allocation11], %s2640_s20, %s2640_s20, %s2641_s26  }
  0x4a   : > { %s2642_s22 = smov [#allocation4]   ;;  %s2643_s8 = smov [#allocation9]  }
  0x4b   : > { %s221_s23 = sshll.u32 %s2642_s22, 4  ;;  %s244_s9 = sshll.u32 %s2643_s8, 4  ;;  %s222_s23 = int_to_ptr.vmem [resolvable:$true] %s221_s23  ;;  %s2808_s9 = int_to_ptr.vmem [resolvable:$true] %s244_s9 }
  0x4c   : > { %s2446_s17 = scalar_lea.hbm %s3392_s1, 128 }
  0x4d   : > { %p2447_p2 = scmp.ne.s32.totalorder %s3392_s1, %s2446_s17  ;;  %p2453_p9 = scmp.lt.u32.totalorder %s2446_s17, %s3392_s1 }
  0x4f   : > { %p2449_p5 = pnand %p2447_p2, %p2766_p1 }
  0x51   : > { %p2450_p6 = pneg %p2449_p5 }
  0x53   : > { %p2455_p10 = pnand %p2453_p9, %p2450_p6 }
  0x55   : > { %2458 = shalt.err (!%p2455_p10)
}
  0x56   : > { %s2459_s20 = scalar_lea.vmem %s222_s23, 128  ;;  %p2467_p4 = scmp.lt.s32.totalorder %s222_s23, %s222_s23 }
  0x57   : > { %p2460_p11 = scmp.ne.s32.totalorder %s222_s23, %s2459_s20  ;;  %p2468_p7 = scmp.lt.s32.totalorder %s2459_s20, %s2459_s20 }
  0x59   : > { %p2462_p0 = pnand %p2460_p11, %p2766_p1  ;;  %p2469_p8 = por %p2468_p7, %p2467_p4 }
  0x5b   : > { %p2463_p3 = pneg %p2462_p0 }
  0x5d   : > { %p2470_p12 = pnand %p2469_p8, %p2463_p3 }
  0x5f   : > { %2473 = shalt.err (!%p2470_p12)
}
  0x60   : > { %2267 = dma.hbm_to_vmem [thread:$0]  (!%p2752_p13), %s3392_s1, 128, %s222_s23, [#allocation5]  }
  0x61   : > { %s2474_s21 = scalar_lea.hbm %s3394_s3, 1536 }
  0x62   : > { %p2475_p2 = scmp.ne.s32.totalorder %s3394_s3, %s2474_s21  ;;  %p2481_p9 = scmp.lt.u32.totalorder %s2474_s21, %s3394_s3 }
  0x64   : > { %p2477_p5 = pnand %p2475_p2, %p2766_p1 }
  0x66   : > { %p2478_p6 = pneg %p2477_p5 }
  0x68   : > { %p2483_p10 = pnand %p2481_p9, %p2478_p6 }
  0x6a   : > { %2486 = shalt.err (!%p2483_p10)
}
  0x6b   : > { %s2487_s23 = scalar_lea.vmem %s2808_s9, 1536  ;;  %p2495_p4 = scmp.lt.s32.totalorder %s2808_s9, %s2808_s9 }
  0x6c   : > { %p2488_p11 = scmp.ne.s32.totalorder %s2808_s9, %s2487_s23  ;;  %p2496_p7 = scmp.lt.s32.totalorder %s2487_s23, %s2487_s23 }
  0x6e   : > { %p2490_p0 = pnand %p2488_p11, %p2766_p1  ;;  %p2497_p8 = por %p2496_p7, %p2495_p4 }
  0x70   : > { %p2491_p3 = pneg %p2490_p0 }
  0x72   : > { %p2498_p12 = pnand %p2497_p8, %p2491_p3 }
  0x74   : > { %2501 = shalt.err (!%p2498_p12)
}
  0x75   : > { %s3436_s10 = smov 4   ;;  %s3437_s18 = smov 64  }
  0x76   : > { %2273 = dma.hbm_to_vmem [thread:$0]  (!%p2752_p13), %s3394_s3, 1536, %s2808_s9, [#allocation8], %s3437_s18, %s3437_s18, %s3436_s10  }
  0x77   : > { %s2644_s19 = smov [#allocation12]   ;;  %s2502_s22 = scalar_lea.hbm %s3396_s5, 1536 }
  0x78   : > { %s270_s17 = sshll.u32 %s2644_s19, 4  ;;  %p2503_p2 = scmp.ne.s32.totalorder %s3396_s5, %s2502_s22  ;;  %s271_s17 = int_to_ptr.vmem [resolvable:$true] %s270_s17 }
  0x79   : > { %p2509_p9 = scmp.lt.u32.totalorder %s2502_s22, %s3396_s5 }
  0x7a   : > { %p2505_p5 = pnand %p2503_p2, %p2766_p1 }
  0x7c   : > { %p2506_p6 = pneg %p2505_p5 }
  0x7e   : > { %p2511_p10 = pnand %p2509_p9, %p2506_p6 }
  0x80   : > { %2514 = shalt.err (!%p2511_p10)
}
  0x81   : > { %s2515_s9 = scalar_lea.vmem %s271_s17, 1536  ;;  %p2523_p4 = scmp.lt.s32.totalorder %s271_s17, %s271_s17 }
  0x82   : > { %p2516_p11 = scmp.ne.s32.totalorder %s271_s17, %s2515_s9  ;;  %p2524_p7 = scmp.lt.s32.totalorder %s2515_s9, %s2515_s9 }
  0x84   : > { %p2518_p0 = pnand %p2516_p11, %p2766_p1  ;;  %p2525_p8 = por %p2524_p7, %p2523_p4 }
  0x86   : > { %p2519_p3 = pneg %p2518_p0 }
  0x88   : > { %p2526_p12 = pnand %p2525_p8, %p2519_p3 }
  0x8a   : > { %2529 = shalt.err (!%p2526_p12)
}
  0x8b   : > { %2279 = dma.hbm_to_vmem [thread:$0]  (!%p2752_p13), %s3396_s5, 1536, %s271_s17, [#allocation11], %s3437_s18, %s3437_s18, %s3436_s10  }
  0x8c   : > { %p3438_p2 = scmp.ne.s32.totalorder %s3432_s13, 0 }
  0x8e   : > { %293 = sbr.rel (%p3438_p2) target bundleno = 1510 (0x5e6), region = 44 }
  0x95   : > { %p3439_p1 = scmp.eq.s32.totalorder %s2713_s28, 0 }
  0x97   : > { %2601 = dma.done.wait (%p3439_p1), [#allocation5], 128   ;;  %p3440_p5 = pmov %p3439_p1 }
  0x98   : > { %p3441_p6 = pmov %p3439_p1 }
  0x99   : > { %2603 = vsyncadd (%p3440_p5), [#allocation5], 4294967168 }
  0x9a   : > { %2605 = dma.done.wait (%p3441_p6), [#allocation8], 2048   ;;  %p3442_p9 = pmov %p3439_p1 }
  0x9b   : > { %p3443_p10 = pmov %p3439_p1 }
  0x9c   : > { %2607 = vsyncadd (%p3442_p9), [#allocation8], 4294965248 }
  0x9d   : > { %2609 = dma.done.wait (%p3443_p10), [#allocation11], 6528   ;;  %p3444_p13 = pmov %p3439_p1 }
  0x9e   : > { %s335_s13 = sand.u32 1, %s2626_s25   ;;  %p340_p11 = scmp.lt.s32.totalorder %s2713_s28, 3  ;;  %v2901_v0 = vld [vmem:[#allocation9] sm:$0xf]  ;;  %v2903_v1 = vld [vmem:[#allocation9 + $0x4] sm:$0xf] }
  0x9f   : > { %2611 = vsyncadd (%p3444_p13), [#allocation11], 4294960768  ;;  %s2893_s16 = sshll.u32 %s335_s13, 3  ;;  %v2905_v2 = vld [vmem:[#allocation9 + $0x8] sm:$0xf]  ;;  %v2939_v20 = vld [vmem:[#allocation10] sm:$0xff] }
  0xa0   : > { %s341_s29 = scalar_select %p340_p11, %s2713_s28, 3  ;;  %v2907_v3 = vld [vmem:[#allocation9 + $0xc] sm:$0xf]  ;;  %v2909_v4 = vld [vmem:[#allocation9 + $0x10] sm:$0xf]  ;;  %v2947_v24 = vld [vmem:[#allocation10 + $0x18] sm:$0xff] }
  0xa1   : > { %v2911_v5 = vld [vmem:[#allocation9 + $0x14] sm:$0xf]  ;;  %v2913_v6 = vld [vmem:[#allocation9 + $0x18] sm:$0xf]  ;;  %v2915_v7 = vld [vmem:[#allocation9 + $0x1c] sm:$0xf] }
  0xa2   : > { %s1917_s10 = sshll.u32 %s341_s29, 2  ;;  %v2917_v8 = vld [vmem:[#allocation9 + $0x20] sm:$0xf]  ;;  %v2919_v9 = vld [vmem:[#allocation9 + $0x24] sm:$0xf]  ;;  %v2943_v22 = vld [vmem:[#allocation10 + $0xc] sm:$0xff] }
  0xa3   : > { %s2899_s17 = scalar_lea.vmem %s3391_s0, %s1917_s10  ;;  %v2921_v10 = vld [vmem:[#allocation9 + $0x28] sm:$0xf]  ;;  %v2923_v11 = vld [vmem:[#allocation9 + $0x2c] sm:$0xf]  ;;  %v2925_v12 = vld [vmem:[#allocation9 + $0x30] sm:$0xf] }
  0xa4   : > { %v2927_v13 = vld [vmem:[#allocation9 + $0x34] sm:$0xf]  ;;  %v2929_v14 = vld [vmem:[#allocation9 + $0x38] sm:$0xf]  ;;  %v2931_v15 = vld [vmem:[#allocation9 + $0x3c] sm:$0xf] }
  0xa5   : > { %v2933_v16 = vld [vmem:[#allocation9 + $0x50] sm:$0x1]  ;;  %v2935_v17 = vld [vmem:[#allocation9 + $0x58] sm:$0x1]  ;;  %v2941_v21 = vld [vmem:[#allocation10 + $0x8] sm:$0xf] }
  0xa6   : > { %v2945_v23 = vld [vmem:[#allocation10 + $0x14] sm:$0xf]  ;;  %v2949_v25 = vld [vmem:[#allocation10 + $0x20] sm:$0xf]  ;;  %v2951_v26 = vld [vmem:[#allocation10 + $0x24] sm:$0xff]  ;;  %s337_s26 = scalar_lea.vmem [#allocation13], %s2893_s16 }
  0xa7   : > { %v2953_v27 = vld [vmem:[#allocation10 + $0x2c] sm:$0xf]  ;;  %v2955_v28 = vld [vmem:[#allocation10 + $0x30] sm:$0xff]  ;;  %v2957_v29 = vld [vmem:[#allocation10 + $0x38] sm:$0xf]  ;;  %p3488_p0 = scmp.ne.s32.totalorder %s2713_s28, 0 }
  0xa8   : > { %v2959_v30 = vld [vmem:[#allocation10 + $0x3c] sm:$0xff]  ;;  %v2961_v31 = vld [vmem:[#allocation10 + $0x44] sm:$0xf]  ;;  %v2963_v32 = vld [vmem:[#allocation10 + $0x48] sm:$0xff]  ;;  %vm2646_vm0 = vmmov (!%p3488_p0), 0   ;;  %vm466_vm1 = vcmask (!%p3488_p0), 261120  }
  0xa9   : > { %v2965_v33 = vld [vmem:[#allocation10 + $0x50] sm:$0xf]  ;;  %v2967_v34 = vld [vmem:[#allocation10 + $0x54] sm:$0xff]  ;;  %v2969_v35 = vld [vmem:[#allocation10 + $0x5c] sm:$0xf] }
  0xaa   : > { %v2971_v36 = vld [vmem:[#allocation10 + $0x60] sm:$0xff]  ;;  %v2973_v37 = vld [vmem:[#allocation10 + $0x68] sm:$0xf]  ;;  %v2975_v38 = vld [vmem:[#allocation10 + $0x6c] sm:$0xff] }
  0xab   : > { %v2977_v39 = vld [vmem:[#allocation10 + $0x74] sm:$0xf]  ;;  %v2979_v40 = vld [vmem:[#allocation10 + $0x78] sm:$0xff]  ;;  %v2981_v41 = vld [vmem:[#allocation10 + $0x80] sm:$0xf] }
  0xac   : > { %3445 = vst [vmem:[#allocation23_spill] sm:$0xff] %v2979_v40  ;;  %v2983_v42 = vld [vmem:[#allocation10 + $0x84] sm:$0xff]  ;;  %v2985_v43 = vld [vmem:[#allocation10 + $0x8c] sm:$0xf]  ;;  %v2987_v44 = vld [vmem:[#allocation10 + $0x90] sm:$0xff] }
  0xad   : > { %3446 = vst [vmem:[#allocation24_spill] sm:$0xff] %v2983_v42  ;;  %3447 = vst [vmem:[#allocation25_spill] sm:$0xff] %v2987_v44  ;;  %v2989_v45 = vld [vmem:[#allocation10 + $0x98] sm:$0xf]  ;;  %v2991_v46 = vld [vmem:[#allocation10 + $0x9c] sm:$0xff] }
  0xae   : > { %3448 = vst [vmem:[#allocation26_spill] sm:$0xff] %v2991_v46  ;;  %v2993_v47 = vld [vmem:[#allocation10 + $0xa4] sm:$0xf]  ;;  %v2995_v48 = vld [vmem:[#allocation10 + $0xa8] sm:$0xff]  ;;  %v2997_v49 = vld [vmem:[#allocation10 + $0xb0] sm:$0xf] }
  0xaf   : > { %3449 = vst [vmem:[#allocation27_spill] sm:$0xff] %v2995_v48  ;;  %v2999_v50 = vld [vmem:[#allocation10 + $0xb4] sm:$0xff]  ;;  %v3001_v51 = vld [vmem:[#allocation10 + $0xbc] sm:$0xf]  ;;  %v3003_v52 = vld [vmem:[#allocation10 + $0xc0] sm:$0xff] }
  0xb0   : > { %3450 = vst [vmem:[#allocation28_spill] sm:$0xff] %v2999_v50  ;;  %3451 = vst [vmem:[#allocation29_spill] sm:$0xff] %v3003_v52  ;;  %v3005_v53 = vld [vmem:[#allocation10 + $0xc8] sm:$0xf]  ;;  %v3007_v54 = vld [vmem:[#allocation10 + $0xcc] sm:$0xff] }
  0xb1   : > { %3452 = vst [vmem:[#allocation30_spill] sm:$0xff] %v3007_v54  ;;  %v3009_v55 = vld [vmem:[#allocation10 + $0xd4] sm:$0xf]  ;;  %v3011_v56 = vld [vmem:[#allocation10 + $0xd8] sm:$0xff]  ;;  %v3013_v57 = vld [vmem:[#allocation10 + $0xe0] sm:$0xf] }
  0xb2   : > { %3453 = vst [vmem:[#allocation31_spill] sm:$0xff] %v3011_v56  ;;  %3454 = vst [vmem:[#allocation32_spill] sm:$0xff] %v3013_v57  ;;  %v3015_v58 = vld [vmem:[#allocation10 + $0xe4] sm:$0xff]  ;;  %v3017_v59 = vld [vmem:[#allocation10 + $0xec] sm:$0xf] }
  0xb3   : > { %3455 = vst [vmem:[#allocation33_spill] sm:$0xff] %v3015_v58  ;;  %3456 = vst [vmem:[#allocation34_spill] sm:$0xff] %v3017_v59  ;;  %v3019_v60 = vld [vmem:[#allocation10 + $0xf0] sm:$0xff]  ;;  %v3021_v61 = vld [vmem:[#allocation10 + $0xf8] sm:$0xf] }
  0xb4   : > { %3457 = vst [vmem:[#allocation35_spill] sm:$0xff] %v3019_v60  ;;  %3458 = vst [vmem:[#allocation36_spill] sm:$0xff] %v3021_v61  ;;  %v3023_v62 = vld [vmem:[#allocation10 + $0xfc] sm:$0xff]  ;;  %v3025_v63 = vld [vmem:[#allocation10 + $0x104] sm:$0xf] }
  0xb5   : > { %3459 = vst [vmem:[#allocation37_spill] sm:$0xff] %v3023_v62  ;;  %3460 = vst [vmem:[#allocation38_spill] sm:$0xff] %v3025_v63  ;;  %v3027_v19 = vld [vmem:[#allocation10 + $0x108] sm:$0x11]  ;;  %v3029_v18 = vld [vmem:[#allocation10 + $0x110] sm:$0x1] }
  0xb6   : > { %3461 = vst [vmem:[#allocation39_spill] sm:$0xff] %v3027_v19  ;;  %3462 = vst [vmem:[#allocation40_spill] sm:$0xff] %v3029_v18  ;;  %v3033_v54 = vld [vmem:[#allocation10 + $0x120] sm:$0x11]  ;;  %v3035_v58 = vld [vmem:[#allocation10 + $0x128] sm:$0x1] }
  0xb7   : > { %3463 = vst [vmem:[#allocation41_spill] sm:$0xff] %v3033_v54  ;;  %3464 = vst [vmem:[#allocation42_spill] sm:$0xff] %v3035_v58  ;;  %v3041_v61 = vld [vmem:[#allocation12] sm:$0xf]  ;;  %v3043_v63 = vld [vmem:[#allocation12 + $0x4] sm:$0xf] }
  0xb8   : > { %3465 = vst [vmem:[#allocation43_spill] sm:$0xff] %v3041_v61  ;;  %3466 = vst [vmem:[#allocation44_spill] sm:$0xff] %v3043_v63  ;;  %v3045_v44 = vld [vmem:[#allocation12 + $0x8] sm:$0xf]  ;;  %v3047_v56 = vld [vmem:[#allocation12 + $0xc] sm:$0xf] }
  0xb9   : > { %3467 = vst [vmem:[#allocation45_spill] sm:$0xff] %v3045_v44  ;;  %3468 = vst [vmem:[#allocation46_spill] sm:$0xff] %v3047_v56  ;;  %v3049_v52 = vld [vmem:[#allocation12 + $0x10] sm:$0xf]  ;;  %v3051_v19 = vld [vmem:[#allocation12 + $0x14] sm:$0xf] }
  0xba   : > { %3469 = vst [vmem:[#allocation47_spill] sm:$0xff] %v3049_v52  ;;  %3470 = vst [vmem:[#allocation48_spill] sm:$0xff] %v3051_v19  ;;  %v3053_v46 = vld [vmem:[#allocation12 + $0x18] sm:$0xf]  ;;  %v3055_v60 = vld [vmem:[#allocation12 + $0x1c] sm:$0xf] }
  0xbb   : > { %3471 = vst [vmem:[#allocation49_spill] sm:$0xff] %v3053_v46  ;;  %3472 = vst [vmem:[#allocation50_spill] sm:$0xff] %v3055_v60  ;;  %v3057_v48 = vld [vmem:[#allocation12 + $0x20] sm:$0xf]  ;;  %v3059_v50 = vld [vmem:[#allocation12 + $0x24] sm:$0xf] }
  0xbc   : > { %3473 = vst [vmem:[#allocation51_spill] sm:$0xff] %v3057_v48  ;;  %3474 = vst [vmem:[#allocation52_spill] sm:$0xff] %v3059_v50  ;;  %v3061_v62 = vld [vmem:[#allocation12 + $0x28] sm:$0xf]  ;;  %v3063_v18 = vld [vmem:[#allocation12 + $0x2c] sm:$0xf] }
  0xbd   : > { %3475 = vst [vmem:[#allocation53_spill] sm:$0xff] %v3061_v62  ;;  %3476 = vst [vmem:[#allocation54_spill] sm:$0xff] %v3063_v18  ;;  %v3065_v58 = vld [vmem:[#allocation12 + $0x30] sm:$0xf]  ;;  %v3067_v54 = vld [vmem:[#allocation12 + $0x34] sm:$0xf] }
  0xbe   : > { %3477 = vst [vmem:[#allocation55_spill] sm:$0xff] %v3065_v58  ;;  %3478 = vst [vmem:[#allocation56_spill] sm:$0xff] %v3067_v54  ;;  %v3069_v52 = vld [vmem:[#allocation12 + $0x38] sm:$0xf]  ;;  %v3071_v19 = vld [vmem:[#allocation12 + $0x3c] sm:$0xf] }
  0xbf   : > { %3479 = vst [vmem:[#allocation57_spill] sm:$0xff] %v3069_v52  ;;  %3480 = vst [vmem:[#allocation58_spill] sm:$0xff] %v3071_v19  ;;  %v3073_v46 = vld [vmem:[#allocation12 + $0x40] sm:$0xf]  ;;  %v3075_v60 = vld [vmem:[#allocation12 + $0x44] sm:$0xf] }
  0xc0   : > { %3481 = vst [vmem:[#allocation59_spill] sm:$0xff] %v3073_v46  ;;  %3482 = vst [vmem:[#allocation60_spill] sm:$0xff] %v3075_v60  ;;  %v3077_v48 = vld [vmem:[#allocation12 + $0x48] sm:$0xf]  ;;  %v3079_v44 = vld [vmem:[#allocation12 + $0x4c] sm:$0xf] }
  0xc1   : > { %3483 = vst [vmem:[#allocation61_spill] sm:$0xff] %v3077_v48  ;;  %3484 = vst [vmem:[#allocation62_spill] sm:$0xff] %v3079_v44  ;;  %v3081_v50 = vld [vmem:[#allocation12 + $0x50] sm:$0xf]  ;;  %v3083_v62 = vld [vmem:[#allocation12 + $0x54] sm:$0xf] }
  0xc2   : > { %3485 = vst [vmem:[#allocation63_spill] sm:$0xff] %v3081_v50  ;;  %3486 = vst [vmem:[#allocation64_spill] sm:$0xff] %v3083_v62  ;;  %v3085_v18 = vld [vmem:[#allocation12 + $0x58] sm:$0x1]  ;;  %446 = sbr.rel (%p3488_p0) target bundleno = 444 (0x1bc), region = 68  ;;  %v447_v52 = vld [vmem:[#allocation4] sm:$0xff] (!%p3488_p0) }
  0xc3   : > { %3487 = vst [vmem:[#allocation65_spill] sm:$0xff] %v3085_v18  ;;  %448 = vst [vmem:[#allocation2] sm:$0xff] (!%p3488_p0), %v447_v52  ;;  %v2645_v19 = vmov (!%p3488_p0), 0.0   ;;  %v2344_v54 = vld [vmem:[#allocation9 + $0x40] sm:$0xff] (!%p3488_p0)   ;;  %v2345_v50 = vld [vmem:[#allocation9 + $0x48] sm:$0xff] (!%p3488_p0)  }
  0xc4   : > { %2076 = vmatprep.subr.bf16.mxu0 (!%p3488_p0), %v2645_v19  ;;  %2084 = vmatprep.subr.bf16.mxu1 (!%p3488_p0), %v2645_v19  ;;  %v453_v58 = vld [vmem:[#allocation7] sm:$0xf] (!%p3488_p0)  ;;  %v512_v18 = vld [vmem:[#allocation7 + $0x4] sm:$0xf] (!%p3488_p0)  ;;  %v559_v52 = vld [vmem:[#allocation7 + $0x8] sm:$0xf] (!%p3488_p0) }
  0xc5   : > { %2080 = vmatprep.mubr.msk.bf16.mxu0 (!%p3488_p0), %vm2646_vm0, %v2645_v19  ;;  %2088 = vmatprep.mubr.msk.bf16.mxu1 (!%p3488_p0), %vm2646_vm0, %v2645_v19  ;;  %v606_v62 = vld [vmem:[#allocation7 + $0xc] sm:$0xf] (!%p3488_p0) }
  0xc6   : > { %2077 = vmatpush3.bf16.msra.mxu0 (!%p3488_p0), %v2344_v54  ;;  %2085 = vmatpush3.bf16.msra.mxu1 (!%p3488_p0), %v2344_v54 }
  0xc7   : > { %2078 = vmatprep.subr.bf16.mxu0 (!%p3488_p0), %v2645_v19  ;;  %2086 = vmatprep.subr.bf16.mxu1 (!%p3488_p0), %v2645_v19 }
  0xca   : > { %2079 = vmatpush3.bf16.msra.mxu0 %v2345_v50  ;;  %2087 = vmatpush3.bf16.msra.mxu1 %v2345_v50 }
  0xcb   : > { %2092 = vmatprep.subr.bf16.mxu0 %v2645_v19  ;;  %2100 = vmatprep.subr.bf16.mxu1 %v2645_v19 }
  0xcd   : > { %2081 = vmatmul.mubr.msk.bf16.vlgmr.msra.gmra.mrb[0].mxu0 %vm466_vm1, %v453_v58  ;;  %2089 = vmatmul.mubr.msk.bf16.vlgmr.msra.gmra.mrb[0].mxu1 %vm466_vm1, %v512_v18  ;;  %v653_v18 = vld [vmem:[#allocation7 + $0x10] sm:$0xf]  ;;  %v700_v58 = vld [vmem:[#allocation7 + $0x14] sm:$0xf] }
  0xce   : > { %2093 = vmatpush3.bf16.msra.mxu0 %v2344_v54  ;;  %2101 = vmatpush3.bf16.msra.mxu1 %v2344_v54 }
  0xcf   : > { %2094 = vmatprep.subr.bf16.mxu0 %v2645_v19  ;;  %2102 = vmatprep.subr.bf16.mxu1 %v2645_v19 }
  0xd0   : > { %2096 = vmatprep.mubr.msk.bf16.mxu0 %vm2646_vm0, %v2645_v19  ;;  %2104 = vmatprep.mubr.msk.bf16.mxu1 %vm2646_vm0, %v2645_v19 }
  0xd2   : > { %2095 = vmatpush3.bf16.msra.mxu0 %v2345_v50  ;;  %2103 = vmatpush3.bf16.msra.mxu1 %v2345_v50 }
  0xd3   : > { %2108 = vmatprep.subr.bf16.mxu0 %v2645_v19  ;;  %2116 = vmatprep.subr.bf16.mxu1 %v2645_v19 }
  0xd5   : > { %2097 = vmatmul.mubr.msk.bf16.vlgmr.msra.gmra.mrb[4].mxu0 %vm466_vm1, %v559_v52  ;;  %2105 = vmatmul.mubr.msk.bf16.vlgmr.msra.gmra.mrb[4].mxu1 %vm466_vm1, %v606_v62  ;;  %v747_v62 = vld [vmem:[#allocation7 + $0x18] sm:$0xf]  ;;  %v794_v52 = vld [vmem:[#allocation7 + $0x1c] sm:$0xf] }
  0xd6   : > { %2109 = vmatpush3.bf16.msra.mxu0 %v2344_v54  ;;  %2117 = vmatpush3.bf16.msra.mxu1 %v2344_v54 }
  0xd7   : > { %2110 = vmatprep.subr.bf16.mxu0 %v2645_v19  ;;  %2118 = vmatprep.subr.bf16.mxu1 %v2645_v19 }
  0xd8   : > { %2112 = vmatprep.mubr.msk.bf16.mxu0 %vm2646_vm0, %v2645_v19  ;;  %2120 = vmatprep.mubr.msk.bf16.mxu1 %vm2646_vm0, %v2645_v19 }
  0xda   : > { %2111 = vmatpush3.bf16.msra.mxu0 %v2345_v50  ;;  %2119 = vmatpush3.bf16.msra.mxu1 %v2345_v50 }
  0xdb   : > { %2124 = vmatprep.subr.bf16.mxu0 %v2645_v19  ;;  %2132 = vmatprep.subr.bf16.mxu1 %v2645_v19 }
  0xdd   : > { %2113 = vmatmul.mubr.msk.bf16.vlgmr.msra.gmra.mrb[8].mxu0 %vm466_vm1, %v653_v18  ;;  %2121 = vmatmul.mubr.msk.bf16.vlgmr.msra.gmra.mrb[8].mxu1 %vm466_vm1, %v700_v58 }
  0xde   : > { %2125 = vmatpush3.bf16.msra.mxu0 %v2344_v54  ;;  %2133 = vmatpush3.bf16.msra.mxu1 %v2344_v54 }
  0xdf   : > { %2126 = vmatprep.subr.bf16.mxu0 %v2645_v19  ;;  %2134 = vmatprep.subr.bf16.mxu1 %v2645_v19 }
  0xe0   : > { %2128 = vmatprep.mubr.msk.bf16.mxu0 %vm2646_vm0, %v2645_v19  ;;  %2136 = vmatprep.mubr.msk.bf16.mxu1 %vm2646_vm0, %v2645_v19 }
  0xe2   : > { %2127 = vmatpush3.bf16.msra.mxu0 %v2345_v50  ;;  %2135 = vmatpush3.bf16.msra.mxu1 %v2345_v50 }
  0xe5   : > { %2129 = vmatmul.mubr.msk.bf16.vlgmr.msra.gmra.mrb[12].mxu0 %vm466_vm1, %v747_v62  ;;  %2137 = vmatmul.mubr.msk.bf16.vlgmr.msra.gmra.mrb[12].mxu1 %vm466_vm1, %v794_v52 }
 0x1a0   : > { %v504_v56 = vpop.f32.mrb[0].mxu0  ;;  %v550_v18 = vpop.f32.mrb[0].mxu1 }
 0x1a1   : > { %510 = vst [vmem:[#allocation3] sm:$0xff] %v504_v56  ;;  %557 = vst [vmem:[#allocation3 + $0x8] sm:$0xff] %v550_v18  ;;  %v2082_v58 = vpop.f32.mrb[1].mxu0  ;;  %v2090_v54 = vpop.f32.mrb[1].mxu1 }
 0x1a2   : > { %v507_v61 = vpop.f32.mrb[2].mxu0  ;;  %v553_v63 = vpop.f32.mrb[2].mxu1 }
 0x1a3   : > { %v2083_v48 = vpop.f32.mrb[3].mxu0  ;;  %v2091_v44 = vpop.f32.mrb[3].mxu1 }
 0x1a8   : > { %v597_v46 = vpop.f32.mrb[4].mxu0  ;;  %v644_v19 = vpop.f32.mrb[4].mxu1 }
 0x1a9   : > { %604 = vst [vmem:[#allocation3 + $0x10] sm:$0xff] %v597_v46  ;;  %651 = vst [vmem:[#allocation3 + $0x18] sm:$0xff] %v644_v19  ;;  %v2098_v50 = vpop.f32.mrb[5].mxu0  ;;  %v2106_v60 = vpop.f32.mrb[5].mxu1 }
 0x1aa   : > { %v600_v57 = vpop.f32.mrb[6].mxu0  ;;  %v647_v62 = vpop.f32.mrb[6].mxu1 }
 0x1ab   : > { %v2099_v59 = vpop.f32.mrb[7].mxu0  ;;  %v2107_v52 = vpop.f32.mrb[7].mxu1 }
 0x1b0   : > { %v691_v40 = vpop.f32.mrb[8].mxu0  ;;  %v738_v42 = vpop.f32.mrb[8].mxu1 }
 0x1b1   : > { %698 = vst [vmem:[#allocation3 + $0x20] sm:$0xff] %v691_v40  ;;  %745 = vst [vmem:[#allocation3 + $0x28] sm:$0xff] %v738_v42  ;;  %v2114_v56 = vpop.f32.mrb[9].mxu0  ;;  %v2122_v18 = vpop.f32.mrb[9].mxu1 }
 0x1b2   : > { %v694_v61 = vpop.f32.mrb[10].mxu0  ;;  %v741_v63 = vpop.f32.mrb[10].mxu1 }
 0x1b3   : > { %v2115_v48 = vpop.f32.mrb[11].mxu0  ;;  %v2123_v44 = vpop.f32.mrb[11].mxu1 }
 0x1b8   : > { %v785_v58 = vpop.f32.mrb[12].mxu0  ;;  %v832_v54 = vpop.f32.mrb[12].mxu1 }
 0x1b9   : > { %792 = vst [vmem:[#allocation3 + $0x30] sm:$0xff] %v785_v58  ;;  %839 = vst [vmem:[#allocation3 + $0x38] sm:$0xff] %v832_v54  ;;  %v2130_v46 = vpop.f32.mrb[13].mxu0  ;;  %v2138_v60 = vpop.f32.mrb[13].mxu1 }
 0x1ba   : > { %v788_v57 = vpop.f32.mrb[14].mxu0  ;;  %v835_v19 = vpop.f32.mrb[14].mxu1 }
 0x1bb   : > { %v2131_v59 = vpop.f32.mrb[15].mxu0  ;;  %v2139_v50 = vpop.f32.mrb[15].mxu1 }
 0x1bc PF: > { %v1929_v40 = vcombine.low %v2901_v0, %v2903_v1  ;;  %v2647_v42 = vmov 0.0   ;;  %v1930_v62 = vcombine.low %v2905_v2, %v2907_v3  ;;  %vm2648_vm2 = vmmov 0   ;;  %v932_v52 = vld [vmem:[#allocation3 + $0x8] sm:$0xff]  ;;  %v935_v54 = vld [vmem:[#allocation3 + $0x20] sm:$0xff]  ;;  %p1989_p3 = scmp.ne.s32.totalorder %s2713_s28, 3 }
 0x1bd   : > { %2140 = vmatprep.subr.bf16.mxu0 %v2647_v42  ;;  %2160 = vmatprep.subr.bf16.mxu1 %v2647_v42  ;;  %v1931_v0 = vcombine.low %v2909_v4, %v2911_v5  ;;  %v1932_v1 = vcombine.low %v2913_v6, %v2915_v7  ;;  %v1933_v2 = vcombine.low %v2917_v8, %v2919_v9  ;;  %v3135_v6 = vld [vmem:[#allocation2] sm:$0xff]  ;;  %v947_v8 = vlaneseq  ;;  %v936_v18 = vld [vmem:[#allocation3 + $0x28] sm:$0xff] }
 0x1be   : > { %2141 = vmatpush3.bf16.msra.mxu0 %v1929_v40  ;;  %2156 = vmatprep.mubr.msk.bf16.mxu0 %vm2648_vm2, %v2647_v42  ;;  %v1934_v3 = vcombine.low %v2921_v10, %v2923_v11  ;;  %v1935_v4 = vcombine.low %v2925_v12, %v2927_v13  ;;  %v1936_v5 = vcombine.low %v2929_v14, %v2931_v15  ;;  %v933_v11 = vld [vmem:[#allocation3 + $0x10] sm:$0xff]  ;;  %v931_v12 = vld [vmem:[#allocation3] sm:$0xff]  ;;  %v934_v13 = vld [vmem:[#allocation3 + $0x18] sm:$0xff]  ;;  %v3489_v14 = vunpack.c.l.bf16 %v2933_v16 }
 0x1bf   : > { %2142 = vmatprep.subr.bf16.mxu0 %v2647_v42  ;;  %2164 = vmatprep.mubr.msk.bf16.mxu1 %vm2648_vm2, %v2647_v42  ;;  %v3140_v7 = vpack.c.bf16 %v3135_v6, %v3135_v6  ;;  %v948_v9 = vshrl.u32 %v947_v8, 7  ;;  %v3490_v8 = vunpack.c.l.bf16 %v2935_v17  ;;  %vm1066_vm3 = vcmask 261120  }
 0x1c0   : > { %v937_v16 = vld [vmem:[#allocation3 + $0x30] sm:$0xff]  ;;  %vm1215_vm4 = vcmask 130048  }
 0x1c1   : > { %v3143_v10 = vsub.s32 0, %v948_v9 }
 0x1c2   : > { %2143 = vmatpush3.bf16.msra.mxu0 %v1930_v62 }
 0x1c3   : > { %2144 = vmatprep.subr.bf16.mxu0 %v2647_v42  ;;  %v950_v15 = vrot.slane %v3489_v14, %v3143_v10  ;;  %v970_v9 = vrot.slane %v3490_v8, %v3143_v10 }
 0x1c6   : > { %2145 = vmatpush3.bf16.msra.mxu0 %v1931_v0  ;;  %v938_v0 = vld [vmem:[#allocation3 + $0x38] sm:$0xff] }
 0x1c7   : > { %2146 = vmatprep.subr.bf16.mxu0 %v2647_v42 }
 0x1ca   : > { %2147 = vmatpush3.bf16.msra.mxu0 %v1932_v1 }
 0x1cb   : > { %2148 = vmatprep.subr.bf16.mxu0 %v2647_v42 }
 0x1ce   : > { %2149 = vmatpush3.bf16.msra.mxu0 %v1933_v2 }
 0x1cf   : > { %2150 = vmatprep.subr.bf16.mxu0 %v2647_v42 }
 0x1d2   : > { %2151 = vmatpush3.bf16.msra.mxu0 %v1934_v3 }
 0x1d3   : > { %2152 = vmatprep.subr.bf16.mxu0 %v2647_v42 }
 0x1d6   : > { %2153 = vmatpush3.bf16.msra.mxu0 %v1935_v4 }
 0x1d7   : > { %2154 = vmatprep.subr.bf16.mxu0 %v2647_v42 }
 0x1da   : > { %2155 = vmatpush3.bf16.msra.mxu0 %v1936_v5 }
 0x1dd   : > { %2157 = vmatmul.mubr.bf16.vlgmr.msra.gmra.mrb[0].mxu0 %v3140_v7 }
 0x2b0   : > { %v925_v56 = vpop.f32.mrb[0].mxu0 }
 0x2b1   : > { %v2158_v61 = vpop.f32.mrb[1].mxu0  ;;  %v941_v63 = vadd.f32 %v933_v11, %v925_v56  ;;  %v939_v48 = vadd.f32 %v931_v12, %v925_v56  ;;  %v942_v44 = vadd.f32 %v934_v13, %v925_v56  ;;  %v940_v58 = vadd.f32 %v932_v52, %v925_v56 }
 0x2b2   : > { %v928_v46 = vpop.f32.mrb[2].mxu0  ;;  %v944_v50 = vadd.f32 %v936_v18, %v925_v56  ;;  %v943_v62 = vadd.f32 %v935_v54, %v925_v56  ;;  %v946_v2 = vadd.f32 %v938_v0, %v925_v56  ;;  %v945_v4 = vadd.f32 %v937_v16, %v925_v56 }
 0x2b3   : > { %v2159_v60 = vpop.f32.mrb[3].mxu0  ;;  %v953_v57 = vadd.f32 %v950_v15, %v941_v63  ;;  %v951_v19 = vadd.f32 %v950_v15, %v939_v48  ;;  %v954_v59 = vadd.f32 %v950_v15, %v942_v44  ;;  %v952_v40 = vadd.f32 %v950_v15, %v940_v58 }
 0x2b4   : > { %v956_v1 = vadd.f32 %v950_v15, %v944_v50  ;;  %v955_v3 = vadd.f32 %v950_v15, %v943_v62  ;;  %v958_v5 = vadd.f32 %v950_v15, %v946_v2  ;;  %v957_v11 = vadd.f32 %v950_v15, %v945_v4 }
 0x2b5   : > { %2346 = vtanh.f32 %v953_v57  ;;  %v1938_v57 = vcombine.high %v2947_v24, %v2951_v26  ;;  %v1941_v50 = vcombine.high %v2955_v28, %v2959_v30  ;;  %v1940_v62 = vcombine.low %v2955_v28, %v2959_v30 }
 0x2b6   : > { %2348 = vtanh.f32 %v951_v19  ;;  %v1937_v19 = vcombine.low %v2947_v24, %v2951_v26  ;;  %v1946_v24 = vcombine.high %v2939_v20, %v2943_v22  ;;  %v2649_v26 = vmov 0  }
 0x2b7   : > { %2350 = vtanh.f32 %v954_v59  ;;  %v1939_v59 = vcombine.low %v2949_v25, %v2953_v27  ;;  %1118 = vmatprep.subr.bf16.mxu0 %v1938_v57  ;;  %1150 = vmatprep.mubr.bf16.mxu0 %v2649_v26 }
 0x2b8   : > { %2352 = vtanh.f32 %v952_v40  ;;  %v1942_v40 = vcombine.low %v2957_v29, %v2961_v31  ;;  %1119 = vmatpush1.bf16.msra.mxu0 %v1937_v19 }
 0x2b9   : > { %2354 = vtanh.f32 %v956_v1  ;;  %2161 = vmatpush3.bf16.msra.mxu1 %v1939_v59  ;;  %1120 = vmatprep.subr.bf16.mxu0 %v1941_v50 }
 0x2ba   : > { %2356 = vtanh.f32 %v955_v3  ;;  %2162 = vmatprep.subr.bf16.mxu1 %v2647_v42 }
 0x2bb   : > { %2358 = vtanh.f32 %v958_v5 }
 0x2bc   : > { %2360 = vtanh.f32 %v957_v11  ;;  %1121 = vmatpush1.bf16.msra.mxu0 %v1940_v62 }
 0x2bd   : > { %2163 = vmatpush3.bf16.msra.mxu1 %v1942_v40  ;;  %2174 = vmatprep.subr.bf16.mxu0 %v2647_v42 }
 0x2be   : > { %1219 = vmatprep.subr.bf16.mxu1 %v1946_v24 }
 0x2bf   : > { %v2347_v12 = vpop.eup %2346 }
 0x2c0   : > { %v2349_v13 = vpop.eup %2348  ;;  %v973_v52 = vmul.f32 %v2347_v12, %v970_v9 }
 0x2c1   : > { %v2351_v14 = vpop.eup %2350  ;;  %v971_v18 = vmul.f32 %v2349_v13, %v970_v9 }
 0x2c2   : > { %v2353_v61 = vpop.eup %2352  ;;  %983 = vadd.xlane.f32.xlu1 %v973_v52  ;;  %v974_v63 = vmul.f32 %v2351_v14, %v970_v9 }
 0x2c3   : > { %979 = vadd.xlane.f32.xlu0 %v971_v18  ;;  %v2355_v56 = vpop.eup %2354  ;;  %v972_v48 = vmul.f32 %v2353_v61, %v970_v9 }
 0x2c4   : > { %v2357_v44 = vpop.eup %2356  ;;  %v976_v17 = vmul.f32 %v2355_v56, %v970_v9 }
 0x2c5   : > { %v2359_v58 = vpop.eup %2358  ;;  %v975_v54 = vmul.f32 %v2357_v44, %v970_v9 }
 0x2c6   : > { %985 = vadd.xlane.f32.xlu1 %v974_v63  ;;  %v2361_v15 = vpop.eup %2360  ;;  %v978_v46 = vmul.f32 %v2359_v58, %v970_v9 }
 0x2c7   : > { %981 = vadd.xlane.f32.xlu0 %v972_v48  ;;  %v977_v60 = vmul.f32 %v2361_v15, %v970_v9 }
 0x2ca   : > { %989 = vadd.xlane.f32.xlu1 %v976_v17 }
 0x2cb   : > { %987 = vadd.xlane.f32.xlu0 %v975_v54 }
 0x2ce   : > { %993 = vadd.xlane.f32.xlu1 %v978_v46 }
 0x2cf   : > { %991 = vadd.xlane.f32.xlu0 %v977_v60 }
 0x34f   : > { %v984_v25 = vpop.xlane.xlu1 %983 }
 0x350   : > { %v980_v27 = vpop.xlane.xlu0 %979 }
 0x353   : > { %v986_v29 = vpop.xlane.xlu1 %985 }
 0x354   : > { %v982_v31 = vpop.xlane.xlu0 %981 }
 0x357   : > { %v990_v0 = vpop.xlane.xlu1 %989 }
 0x358   : > { %v988_v16 = vpop.xlane.xlu0 %987  ;;  %v996_v1 = vmax.f32 %v982_v31, %v990_v0 }
 0x359   : > { %v995_v28 = vmax.f32 %v980_v27, %v988_v16 }
 0x35b   : > { %v994_v30 = vpop.xlane.xlu1 %993  ;;  %v999_v5 = vmax.f32 %v995_v28, %v996_v1  ;;  %v1997_v28 = vld [vmem:[#allocation7] sm:$0xff]  }
 0x35c   : > { %v998_v2 = vmax.f32 %v986_v29, %v994_v30  ;;  %v992_v3 = vpop.xlane.xlu0 %991 }
 0x35d   : > { %v997_v4 = vmax.f32 %v984_v25, %v992_v3 }
 0x35f   : > { %v1000_v8 = vmax.f32 %v997_v4, %v998_v2  ;;  %v1998_v2 = vunpack.c.l.bf16 %v1997_v28 }
 0x361   : > { %v1001_v9 = vmax.f32 %v999_v5, %v1000_v8  ;;  %v2013_v5 = vld [vmem:[#allocation7 + $0x10] sm:$0xff]  }
 0x363   : > { %v1002_v11 = vsub.f32 %v980_v27, %v1001_v9  ;;  %v1003_v12 = vsub.f32 %v982_v31, %v1001_v9  ;;  %v1004_v13 = vsub.f32 %v984_v25, %v1001_v9  ;;  %v1005_v52 = vsub.f32 %v986_v29, %v1001_v9 }
 0x364   : > { %v1006_v61 = vsub.f32 %v988_v16, %v1001_v9  ;;  %v1007_v56 = vsub.f32 %v990_v0, %v1001_v9  ;;  %v1008_v44 = vsub.f32 %v992_v3, %v1001_v9  ;;  %v1009_v58 = vsub.f32 %v994_v30, %v1001_v9  ;;  %v2012_v30 = vld [vmem:[#allocation7 + $0x8] sm:$0xff]  }
 0x365   : > { %v1010_v14 = vmul.f32 1.442695, %v1002_v11  ;;  %v1012_v18 = vmul.f32 1.442695, %v1003_v12  ;;  %v1014_v63 = vmul.f32 1.442695, %v1004_v13  ;;  %v1999_v3 = vunpack.c.h.bf16 %v1997_v28 }
 0x366   : > { %v1016_v48 = vmul.f32 1.442695, %v1005_v52  ;;  %v1018_v17 = vmul.f32 1.442695, %v1006_v61  ;;  %v1020_v54 = vmul.f32 1.442695, %v1007_v56  ;;  %v2002_v4 = vunpack.c.l.bf16 %v2012_v30 }
 0x367   : > { %2362 = vpow2.f32 %v1010_v14  ;;  %v1022_v15 = vmul.f32 1.442695, %v1008_v44  ;;  %v1024_v46 = vmul.f32 1.442695, %v1009_v58  ;;  %v2003_v13 = vunpack.c.h.bf16 %v2012_v30 }
 0x368   : > { %2364 = vpow2.f32 %v1012_v18  ;;  %v2006_v14 = vunpack.c.l.bf16 %v2013_v5  ;;  %v2007_v44 = vunpack.c.h.bf16 %v2013_v5  ;;  %v1945_v5 = vcombine.low %v2939_v20, %v2943_v22  ;;  %v3194_v20 = vld [vmem:[%s2899_s17] sm:$0xf] }
 0x369   : > { %2366 = vpow2.f32 %v1014_v63  ;;  %v1947_v22 = vcombine.low %v2941_v21, %v2945_v23  ;;  %v1950_v21 = vcombine.low %v2963_v32, %v2967_v34  ;;  %v1964_v23 = vcombine.low %v2997_v49, %v3001_v51  ;;  %v3493_v49 = vld [vmem:[#allocation34_spill] sm:$0xff]  ;;  %v3494_v51 = vld [vmem:[#allocation32_spill] sm:$0xff] }
 0x36a   : > { %2368 = vpow2.f32 %v1016_v48  ;;  %v2014_v48 = vld [vmem:[#allocation7 + $0x18] sm:$0xff]  }
 0x36b   : > { %2370 = vpow2.f32 %v1018_v17 }
 0x36c   : > { %2372 = vpow2.f32 %v1020_v54 }
 0x36d   : > { %2374 = vpow2.f32 %v1022_v15 }
 0x36e   : > { %2376 = vpow2.f32 %v1024_v46 }
 0x371   : > { %v2363_v60 = vpop.eup %2362 }
 0x372   : > { %v2365_v57 = vpop.eup %2364 }
 0x373   : > { %v1026_v19 = vadd.f32 %v2365_v57, %v2363_v60  ;;  %v2367_v59 = vpop.eup %2366 }
 0x374   : > { %v2369_v40 = vpop.eup %2368 }
 0x375   : > { %v1027_v50 = vadd.f32 %v2367_v59, %v1026_v19  ;;  %v2371_v24 = vpop.eup %2370 }
 0x376   : > { %v2373_v27 = vpop.eup %2372 }
 0x377   : > { %v1028_v62 = vadd.f32 %v2369_v40, %v1027_v50  ;;  %v2375_v31 = vpop.eup %2374 }
 0x378   : > { %v2377_v16 = vpop.eup %2376 }
 0x379   : > { %v1029_v25 = vadd.f32 %v2371_v24, %v1028_v62  ;;  %v2011_v62 = vunpack.c.h.bf16 %v2014_v48 }
 0x37b   : > { %v1030_v29 = vadd.f32 %v2373_v27, %v1029_v25 }
 0x37d   : > { %v1031_v0 = vadd.f32 %v2375_v31, %v1030_v29 }
 0x37f   : > { %v1032_v1 = vadd.f32 %v2377_v16, %v1031_v0 }
 0x381   : > { %2378 = vrcp.f32 %v1032_v1 }
 0x38b   : > { %v2379_v8 = vpop.eup %2378 }
 0x38c   : > { %v1034_v9 = vmul.f32 %v2379_v8, %v2363_v60  ;;  %v1035_v11 = vmul.f32 %v2379_v8, %v2365_v57  ;;  %v1036_v12 = vmul.f32 %v2379_v8, %v2367_v59  ;;  %v1037_v52 = vmul.f32 %v2379_v8, %v2369_v40 }
 0x38d   : > { %v1038_v18 = vmul.f32 %v2379_v8, %v2371_v24  ;;  %v1039_v17 = vmul.f32 %v2379_v8, %v2373_v27  ;;  %v2010_v60 = vunpack.c.l.bf16 %v2014_v48  ;;  %v1040_v57 = vmul.f32 %v2379_v8, %v2375_v31  ;;  %v3502_v48 = vld [vmem:[#allocation59_spill] sm:$0xff] }
 0x38e   : > { %v1058_v61 = vmul.f32 %v1998_v2, %v1034_v9  ;;  %v1059_v63 = vmul.f32 %v1999_v3, %v1035_v11  ;;  %v1060_v56 = vmul.f32 %v2002_v4, %v1036_v12  ;;  %v1061_v58 = vmul.f32 %v2003_v13, %v1037_v52  ;;  %v3498_v13 = vld [vmem:[#allocation36_spill] sm:$0xff] }
 0x38f   : > { %v1062_v19 = vmul.f32 %v2006_v14, %v1038_v18  ;;  %v1041_v40 = vmul.f32 %v2379_v8, %v2377_v16  ;;  %v1063_v24 = vmul.f32 %v2007_v44, %v1039_v17  ;;  %v1064_v0 = vmul.f32 %v2010_v60, %v1040_v57  ;;  %v3499_v14 = vld [vmem:[#allocation28_spill] sm:$0xff]  ;;  %v3500_v18 = vld [vmem:[#allocation27_spill] sm:$0xff]  ;;  %v3503_v17 = vld [vmem:[#allocation30_spill] sm:$0xff] }
 0x390   : > { %v1067_v54 = vsel %vm1066_vm3, %v1058_v61, 0.0  ;;  %v1068_v15 = vsel %vm1066_vm3, %v1059_v63, 0.0  ;;  %v1070_v59 = vsel %vm1066_vm3, %v1060_v56, 0.0  ;;  %v1072_v25 = vsel %vm1066_vm3, %v1061_v58, 0.0  ;;  %v3501_v56 = vld [vmem:[#allocation60_spill] sm:$0xff]  ;;  %v3504_v58 = vld [vmem:[#allocation29_spill] sm:$0xff] }
 0x391   : > { %v1069_v46 = vadd.f32 %v1068_v15, %v1067_v54  ;;  %v1074_v27 = vsel %vm1066_vm3, %v1062_v19, 0.0  ;;  %v1065_v28 = vmul.f32 %v2011_v62, %v1041_v40  ;;  %v1076_v30 = vsel %vm1066_vm3, %v1063_v24, 0.0  ;;  %v3506_v60 = vld [vmem:[#allocation61_spill] sm:$0xff]  ;;  %v3510_v24 = vld [vmem:[#allocation35_spill] sm:$0xff] }
 0x392   : > { %v1078_v31 = vsel %vm1066_vm3, %v1064_v0, 0.0  ;;  %v1952_v8 = vcombine.low %v2965_v33, %v2969_v35  ;;  %v1955_v11 = vcombine.low %v2973_v37, %v2977_v39  ;;  %v1958_v33 = vcombine.low %v2981_v41, %v2985_v43  ;;  %v3507_v19 = vld [vmem:[#allocation33_spill] sm:$0xff]  ;;  %v3511_v0 = vld [vmem:[#allocation44_spill] sm:$0xff] }
 0x393   : > { %v1071_v50 = vadd.f32 %v1070_v59, %v1069_v46  ;;  %v1080_v4 = vsel %vm1066_vm3, %v1065_v28, 0.0  ;;  %v1951_v35 = vcombine.high %v2963_v32, %v2967_v34  ;;  %v1961_v37 = vcombine.low %v2989_v45, %v2993_v47  ;;  %v3491_v32 = vld [vmem:[#allocation24_spill] sm:$0xff]  ;;  %v3492_v34 = vld [vmem:[#allocation23_spill] sm:$0xff]  ;;  %v3505_v46 = vld [vmem:[#allocation62_spill] sm:$0xff] }
 0x394   : > { %v1954_v39 = vcombine.high %v2971_v36, %v2975_v38  ;;  %v1953_v41 = vcombine.low %v2971_v36, %v2975_v38  ;;  %v1967_v43 = vcombine.low %v3005_v53, %v3009_v55  ;;  %v1957_v45 = vcombine.high %v3492_v34, %v3491_v32  ;;  %v3495_v36 = vld [vmem:[#allocation26_spill] sm:$0xff]  ;;  %v3496_v38 = vld [vmem:[#allocation25_spill] sm:$0xff]  ;;  %v3508_v59 = vld [vmem:[#allocation31_spill] sm:$0xff] }
 0x395   : > { %v1073_v29 = vadd.f32 %v1072_v25, %v1071_v50  ;;  %v1956_v47 = vcombine.low %v3492_v34, %v3491_v32  ;;  %v1970_v12 = vcombine.low %v3494_v51, %v3493_v49  ;;  %v1960_v53 = vcombine.high %v3496_v38, %v3495_v36  ;;  %v3509_v62 = vld [vmem:[#allocation37_spill] sm:$0xff]  ;;  %v3513_v28 = vld [vmem:[#allocation46_spill] sm:$0xff] }
 0x396   : > { %v1959_v55 = vcombine.low %v3496_v38, %v3495_v36  ;;  %v1963_v61 = vcombine.high %v3500_v18, %v3499_v14  ;;  %v1962_v63 = vcombine.low %v3500_v18, %v3499_v14  ;;  %v1976_v44 = vcombine.low %v3502_v48, %v3501_v56  ;;  %v3527_v32 = vld [vmem:[#allocation58_spill] sm:$0xff]  ;;  %v3528_v34 = vld [vmem:[#allocation57_spill] sm:$0xff] }
 0x397   : > { %v1075_v1 = vadd.f32 %v1074_v27, %v1073_v29  ;;  %v1966_v54 = vcombine.high %v3504_v58, %v3503_v17  ;;  %v1965_v15 = vcombine.low %v3504_v58, %v3503_v17  ;;  %v1977_v57 = vcombine.low %v3506_v60, %v3505_v46  ;;  %v3512_v27 = vld [vmem:[#allocation43_spill] sm:$0xff] }
 0x398   : > { %v1969_v50 = vcombine.high %v3508_v59, %v3507_v19  ;;  %v1968_v40 = vcombine.low %v3508_v59, %v3507_v19  ;;  %v1972_v25 = vcombine.high %v3510_v24, %v3509_v62  ;;  %v1971_v29 = vcombine.low %v3510_v24, %v3509_v62  ;;  %v3532_v19 = vld [vmem:[#allocation41_spill] sm:$0xff] }
 0x399   : > { %v1077_v2 = vadd.f32 %v1076_v30, %v1075_v1  ;;  %v1979_v1 = vcombine.low %v3512_v27, %v3511_v0  ;;  %v3514_v30 = vld [vmem:[#allocation45_spill] sm:$0xff]  ;;  %v3533_v59 = vunpack.c.l.bf16 %v3532_v19  ;;  %v3534_v62 = vunpack.c.h.bf16 %v3532_v19 }
 0x39b   : > { %v1079_v3 = vadd.f32 %v1078_v31, %v1077_v2  ;;  %v1980_v2 = vcombine.low %v3514_v30, %v3513_v28  ;;  %v3515_v31 = vld [vmem:[#allocation48_spill] sm:$0xff]  ;;  %v1322_v24 = vrot.slane %v3534_v62, %v3143_v10 }
 0x39d   : > { %v1081_v16 = vadd.f32 %v1080_v4, %v1079_v3  ;;  %v3516_v3 = vld [vmem:[#allocation47_spill] sm:$0xff] }
 0x39e   : > { %v1981_v4 = vcombine.low %v3516_v3, %v3515_v31 }
 0x39f   : > { %v3180_v9 = vpack.c.bf16 %v1081_v16, %v1081_v16  ;;  %v3518_v16 = vld [vmem:[#allocation49_spill] sm:$0xff] }
 0x3a1   : > { %1943 = vmatmul.mubr.msk.bf16.vlgmr.msra.gmra.mrb[4].mxu0 %vm1066_vm3, %v3180_v9  ;;  %2165 = vmatmul.mubr.msk.bf16.vlgmr.msra.gmra.mrb[0].mxu1 %vm1066_vm3, %v3180_v9 }
 0x3a2   : > { %1220 = vmatpush1.bf16.msra.mxu1 %v1945_v5  ;;  %2175 = vmatpush3.bf16.msra.mxu0 %v1952_v8  ;;  %v3519_v8 = vld [vmem:[#allocation64_spill] sm:$0xff] }
 0x3a3   : > { %2176 = vmatprep.subr.bf16.mxu0 %v2647_v42  ;;  %1251 = vmatprep.mubr.bf16.mxu1 %v2649_v26 }
 0x3a4   : > { %2168 = vmatprep.subr.bf16.mxu1 %v2647_v42  ;;  %2190 = vmatprep.mubr.msk.bf16.mxu0 %vm2648_vm2, %v2647_v42 }
 0x3a6   : > { %2177 = vmatpush3.bf16.msra.mxu0 %v1955_v11 }
 0x3a7   : > { %2178 = vmatprep.subr.bf16.mxu0 %v2647_v42 }
 0x3a9   : > { %1948 = vmatmul.mubr.msk.bf16.vlgmr.msra.gmra.mrb[4].mxu1 %vm1215_vm4, %v3194_v20 }
 0x3aa   : > { %2169 = vmatpush3.bf16.msra.mxu1 %v1947_v22  ;;  %2179 = vmatpush3.bf16.msra.mxu0 %v1958_v33  ;;  %v3521_v22 = vld [vmem:[#allocation52_spill] sm:$0xff]  ;;  %v3522_v33 = vld [vmem:[#allocation51_spill] sm:$0xff] }
 0x3ab   : > { %2180 = vmatprep.subr.bf16.mxu0 %v2647_v42  ;;  %2170 = vmatprep.mubr.msk.bf16.mxu1 %vm2648_vm2, %v2647_v42 }
 0x3ac   : > { %1455 = vmatprep.subr.bf16.mxu1 %v1951_v35  ;;  %v1983_v35 = vcombine.low %v3522_v33, %v3521_v22 }
 0x3ae   : > { %2181 = vmatpush3.bf16.msra.mxu0 %v1961_v37  ;;  %v3523_v37 = vld [vmem:[#allocation54_spill] sm:$0xff] }
 0x3af   : > { %2182 = vmatprep.subr.bf16.mxu0 %v2647_v42 }
 0x3b1   : > { %2171 = vmatmul.mubr.msk.bf16.vlgmr.msra.gmra.mrb[8].mxu1 %vm1215_vm4, %v3194_v20 }
 0x3b2   : > { %1456 = vmatpush1.bf16.msra.mxu1 %v1950_v21  ;;  %2183 = vmatpush3.bf16.msra.mxu0 %v1964_v23  ;;  %v3524_v21 = vld [vmem:[#allocation53_spill] sm:$0xff] }
 0x3b3   : > { %1457 = vmatprep.subr.bf16.mxu1 %v1954_v39  ;;  %2184 = vmatprep.subr.bf16.mxu0 %v2647_v42  ;;  %v1984_v23 = vcombine.low %v3524_v21, %v3523_v37  ;;  %v3525_v39 = vld [vmem:[#allocation56_spill] sm:$0xff] }
 0x3b4   : > { %1487 = vmatprep.mubr.bf16.mxu1 %v2649_v26  ;;  %v3497_v26 = vld [vmem:[#allocation38_spill] sm:$0xff] }
 0x3b5   : > { %v1973_v52 = vcombine.low %v3498_v13, %v3497_v26 }
 0x3b6   : > { %1458 = vmatpush1.bf16.msra.mxu1 %v1953_v41  ;;  %2185 = vmatpush3.bf16.msra.mxu0 %v1967_v43  ;;  %v3526_v41 = vld [vmem:[#allocation55_spill] sm:$0xff] }
 0x3b7   : > { %1459 = vmatprep.subr.bf16.mxu1 %v1957_v45  ;;  %2186 = vmatprep.subr.bf16.mxu0 %v2647_v42  ;;  %v1985_v43 = vcombine.low %v3526_v41, %v3525_v39  ;;  %v1986_v45 = vcombine.low %v3528_v34, %v3527_v32 }
 0x3ba   : > { %1460 = vmatpush1.bf16.msra.mxu1 %v1956_v47  ;;  %2187 = vmatpush3.bf16.msra.mxu0 %v1970_v12 }
 0x3bb   : > { %1461 = vmatprep.subr.bf16.mxu1 %v1960_v53  ;;  %2188 = vmatprep.subr.bf16.mxu0 %v2647_v42 }
 0x3be   : > { %1462 = vmatpush1.bf16.msra.mxu1 %v1959_v55  ;;  %2189 = vmatpush3.bf16.msra.mxu0 %v1973_v52 }
 0x3bf   : > { %1463 = vmatprep.subr.bf16.mxu1 %v1963_v61  ;;  %2194 = vmatprep.subr.bf16.mxu0 %v2647_v42 }
 0x3c1   : > { %2191 = vmatmul.mubr.bf16.vlgmr.msra.gmra.mrb[8].mxu0 %v3140_v7 }
 0x3c2   : > { %1464 = vmatpush1.bf16.msra.mxu1 %v1962_v63  ;;  %2195 = vmatpush3.bf16.msra.mxu0 %v1976_v44 }
 0x3c3   : > { %1465 = vmatprep.subr.bf16.mxu1 %v1966_v54  ;;  %2196 = vmatprep.subr.bf16.mxu0 %v2647_v42 }
 0x3c4   : > { %2198 = vmatprep.mubr.msk.bf16.mxu0 %vm2648_vm2, %v2647_v42 }
 0x3c6   : > { %1466 = vmatpush1.bf16.msra.mxu1 %v1965_v15  ;;  %2197 = vmatpush3.bf16.msra.mxu0 %v1977_v57 }
 0x3c7   : > { %1467 = vmatprep.subr.bf16.mxu1 %v1969_v50  ;;  %2222 = vmatprep.subr.bf16.mxu0 %v2647_v42  ;;  %v1318_v50 = vrot.slane %v3533_v59, %v3143_v10 }
 0x3c9   : > { %2199 = vmatmul.mubr.msk.bf16.vlgmr.msra.gmra.mrb[12].mxu0 %vm1066_vm3, %v3180_v9  ;;  %v3520_v9 = vld [vmem:[#allocation63_spill] sm:$0xff] }
 0x3ca   : > { %1468 = vmatpush1.bf16.msra.mxu1 %v1968_v40  ;;  %2224 = vmatprep.mubr.msk.bf16.mxu0 %vm2648_vm2, %v2647_v42  ;;  %v1987_v11 = vcombine.low %v3520_v9, %v3519_v8 }
 0x3cb   : > { %1469 = vmatprep.subr.bf16.mxu1 %v1972_v25 }
 0x3cc   : > { %2223 = vmatpush3.bf16.msra.mxu0 %v1987_v11  ;;  %v3537_v11 = vld [vmem:[#allocation40_spill] sm:$0xff] }
 0x3cd   : > { %v3538_v22 = vunpack.c.l.bf16 %v3537_v11 }
 0x3ce   : > { %1470 = vmatpush1.bf16.msra.mxu1 %v1971_v29 }
 0x3cf   : > { %2202 = vmatprep.subr.bf16.mxu1 %v2647_v42  ;;  %v1311_v33 = vrot.slane %v3538_v22, %v3143_v10 }
 0x3d1   : > { %1488 = vmatmul.mubr.bf16.vlgmr.msra.gmra.mrb[4].mxu1 %v3140_v7  ;;  %v3517_v7 = vld [vmem:[#allocation50_spill] sm:$0xff]  ;;  %2225 = vmatmul.mubr.msk.bf16.vlgmr.msra.gmra.mrb[16].mxu0 %vm1215_vm4, %v3194_v20 }
 0x3d2   : > { %2218 = vmatprep.mubr.msk.bf16.mxu1 %vm2648_vm2, %v2647_v42  ;;  %2203 = vmatpush3.bf16.msra.mxu1 %v1979_v1  ;;  %v1982_v5 = vcombine.low %v3518_v16, %v3517_v7  ;;  %v3535_v16 = vld [vmem:[#allocation42_spill] sm:$0xff] }
 0x3d3   : > { %2204 = vmatprep.subr.bf16.mxu1 %v2647_v42 }
 0x3d6   : > { %2205 = vmatpush3.bf16.msra.mxu1 %v1980_v2 }
 0x3d7   : > { %2206 = vmatprep.subr.bf16.mxu1 %v2647_v42 }
 0x3da   : > { %2207 = vmatpush3.bf16.msra.mxu1 %v1981_v4 }
 0x3db   : > { %2208 = vmatprep.subr.bf16.mxu1 %v2647_v42 }
 0x3de   : > { %2209 = vmatpush3.bf16.msra.mxu1 %v1982_v5  ;;  %v3536_v5 = vunpack.c.l.bf16 %v3535_v16 }
 0x3df   : > { %2210 = vmatprep.subr.bf16.mxu1 %v2647_v42 }
 0x3e0   : > { %v1326_v8 = vrot.slane %v3536_v5, %v3143_v10 }
 0x3e2   : > { %2211 = vmatpush3.bf16.msra.mxu1 %v1983_v35 }
 0x3e3   : > { %2212 = vmatprep.subr.bf16.mxu1 %v2647_v42 }
 0x3e6   : > { %2213 = vmatpush3.bf16.msra.mxu1 %v1984_v23 }
 0x3e7   : > { %2214 = vmatprep.subr.bf16.mxu1 %v2647_v42 }
 0x3ea   : > { %2215 = vmatpush3.bf16.msra.mxu1 %v1985_v43 }
 0x3eb   : > { %2216 = vmatprep.subr.bf16.mxu1 %v2647_v42  ;;  %v3529_v42 = vld [vmem:[#allocation39_spill] sm:$0xff] }
 0x3ec   : > { %v3530_v48 = vunpack.c.l.bf16 %v3529_v42  ;;  %v3531_v17 = vunpack.c.h.bf16 %v3529_v42 }
 0x3ee   : > { %2217 = vmatpush3.bf16.msra.mxu1 %v1986_v45  ;;  %v1303_v44 = vrot.slane %v3530_v48, %v3143_v10  ;;  %v1307_v58 = vrot.slane %v3531_v17, %v3143_v10 }
 0x474   : > { %v1152_v20 = vpop.f32.mrb[4].mxu0  ;;  %v1193_v47 = vpop.f32.mrb[0].mxu1 }
 0x475   : > { %v1154_v49 = vpop.f32.mrb[5].mxu0  ;;  %v2166_v51 = vpop.f32.mrb[1].mxu1  ;;  %v2228_v60 = vadd.f32 %v1303_v44, %v1152_v20 }
 0x476   : > { %v1156_v12 = vpop.f32.mrb[6].mxu0  ;;  %v1196_v36 = vpop.f32.mrb[2].mxu1  ;;  %v2231_v40 = vadd.f32 %v1307_v58, %v1154_v49 }
 0x477   : > { %v1157_v38 = vpop.f32.mrb[7].mxu0  ;;  %v2167_v53 = vpop.f32.mrb[3].mxu1  ;;  %v2229_v25 = vadd.f32 %v2228_v60, %v1318_v50 }
 0x478   : > { %v2232_v0 = vadd.f32 %v2231_v40, %v1322_v24 }
 0x484   : > { %v1294_v55 = vpop.f32.mrb[8].mxu1 }
 0x485   : > { %v1295_v26 = vadd.f32 %v1294_v55, %v1193_v47  ;;  %v2172_v13 = vpop.f32.mrb[9].mxu1 }
 0x486   : > { %v1297_v52 = vpop.f32.mrb[10].mxu1 }
 0x487   : > { %v2173_v14 = vpop.f32.mrb[11].mxu1  ;;  %v1314_v23 = vadd.f32 %v1311_v33, %v1295_v26  ;;  %v3539_v26 = vld [vmem:[#allocation65_spill] sm:$0xff] }
 0x488   : > { %v3540_v13 = vunpack.c.l.bf16 %v3539_v26 }
 0x48a   : > { %v1748_v52 = vrot.slane %v3540_v13, %v3143_v10 }
 0x494   : > { %v1530_v18 = vpop.f32.mrb[8].mxu0 }
 0x495   : > { %v2192_v61 = vpop.f32.mrb[9].mxu0  ;;  %v1531_v35 = vadd.f32 %v1530_v18, %v1326_v8 }
 0x496   : > { %v1533_v63 = vpop.f32.mrb[10].mxu0 }
 0x497   : > { %v2193_v56 = vpop.f32.mrb[11].mxu0 }
 0x49c   : > { %v1604_v54 = vpop.f32.mrb[12].mxu0 }
 0x49d   : > { %v2200_v15 = vpop.f32.mrb[13].mxu0 }
 0x49e   : > { %v1607_v46 = vpop.f32.mrb[14].mxu0 }
 0x49f   : > { %v2201_v57 = vpop.f32.mrb[15].mxu0 }
 0x4a4   : > { %v1489_v29 = vpop.f32.mrb[4].mxu1  ;;  %v1738_v51 = vpop.f32.mrb[16].mxu0 }
 0x4a5   : > { %v2230_v27 = vadd.f32 %v2229_v25, %v1489_v29  ;;  %v1491_v1 = vpop.f32.mrb[5].mxu1  ;;  %v2226_v12 = vpop.f32.mrb[17].mxu0 }
 0x4a6   : > { %v2233_v28 = vadd.f32 %v2232_v0, %v1491_v1  ;;  %v1493_v30 = vpop.f32.mrb[6].mxu1  ;;  %v1741_v36 = vpop.f32.mrb[18].mxu0 }
 0x4a7   : > { %v1974_v2 = vmul.f32 -1.442695, %v2230_v27  ;;  %v1494_v31 = vpop.f32.mrb[7].mxu1  ;;  %v2227_v38 = vpop.f32.mrb[19].mxu0 }
 0x4a8   : > { %v1975_v3 = vmul.f32 -1.442695, %v2233_v28 }
 0x4a9   : > { %2380 = vpow2.f32 %v1974_v2 }
 0x4aa   : > { %2382 = vpow2.f32 %v1975_v3 }
 0x4b3   : > { %v2381_v4 = vpop.eup %2380 }
 0x4b4   : > { %v1540_v7 = vadd.f32 1.0, %v2381_v4  ;;  %v2383_v9 = vpop.eup %2382 }
 0x4b5   : > { %v1547_v37 = vadd.f32 1.0, %v2383_v9 }
 0x4b6   : > { %2384 = vrcp.f32 %v1540_v7 }
 0x4b7   : > { %2386 = vrcp.f32 %v1547_v37 }
 0x4c0   : > { %v2385_v21 = vpop.eup %2384 }
 0x4c1   : > { %v1550_v39 = vmul.f32 %v2385_v21, %v1531_v35  ;;  %v2387_v43 = vpop.eup %2386 }
 0x4c2   : > { %v1553_v32 = vsub.f32 1.0, %v2387_v43  ;;  %v1555_v20 = vmul.f32 %v2387_v43, %v3135_v6 }
 0x4c3   : > { %v1551_v41 = vadd.f32 %v1550_v39, %v1314_v23 }
 0x4c5   : > { %2388 = vtanh.f32 %v1551_v41 }
 0x4cf   : > { %v2389_v34 = vpop.eup %2388 }
 0x4d0   : > { %v1554_v45 = vmul.f32 %v2389_v34, %v1553_v32 }
 0x4d2   : > { %v1556_v47 = vadd.f32 %v1555_v20, %v1554_v45 }
 0x4d4   : > { %v1557_v49 = vpack.c.bf16 %v1556_v47, %v1556_v47  ;;  %1751 = vst [vmem:[#allocation2] sm:$0xff] %v1556_v47  ;;  %1756 = vst [vmem:[#allocation14] sm:$0xff] (!%p1989_p3), %v1556_v47 }
 0x4d6   : > { %2219 = vmatmul.mubr.bf16.vlgmr.msra.gmra.mrb[12].mxu1 %v1557_v49 }
 0x5a9   : > { %v1692_v53 = vpop.f32.mrb[12].mxu1 }
 0x5aa   : > { %v1693_v55 = vadd.f32 %v1692_v53, %v1604_v54  ;;  %v2220_v14 = vpop.f32.mrb[13].mxu1  ;;  %1755 = sbr.rel (%p1989_p3) target bundleno = 1457 (0x5b1), region = 72 }
 0x5ab   : > { %v1695_v18 = vpop.f32.mrb[14].mxu1 }
 0x5ac   : > { %v1744_v61 = vadd.f32 %v1738_v51, %v1693_v55  ;;  %v2221_v63 = vpop.f32.mrb[15].mxu1 }
 0x5ae   : > { %v1749_v6 = vadd.f32 %v1748_v52, %v1744_v61 }
 0x5b0   : > { %1750 = vst [vmem:[%s337_s26] sm:$0xff] %v1749_v6 }
 0x5b1 PF: > { %s1991_s21 = sshll.u32 %s2713_s28, 7  ;;  %s1771_s15 = sshll.u32 %s337_s26, 4  ;;  %s1772_s15 = int_to_ptr.vmem [resolvable:$true] %s1771_s15 }
 0x5b2   : > { %s3329_s14 = scalar_lea.hbm %s3397_s6, %s1991_s21  ;;  %s1758_s23 = scalar_lea.sflag [#allocation6], %s335_s13 }
 0x5b3   : > { %s2530_s9 = scalar_lea.vmem %s1772_s15, 128  ;;  %p3541_p7 = scmp.ne.s32.totalorder %s3430_s11, 0 }
 0x5b4   : > { %p2531_p4 = scmp.ne.s32.totalorder %s1772_s15, %s2530_s9  ;;  %s2650_s20 = smov [#allocation13]  }
 0x5b5   : > { %s2534_s2 = sshll.u32 %s2650_s20, 4  ;;  %s2535_s2 = int_to_ptr.vmem [resolvable:$false] %s2534_s2 }
 0x5b6   : > { %p2532_p8 = pnand %p2531_p4, %p3541_p7  ;;  %s2536_s29 = scalar_lea.vmem %s2535_s2, 256 }
 0x5b7   : > { %p2537_p2 = scmp.lt.s32.totalorder %s1772_s15, %s2535_s2  ;;  %p2538_p1 = scmp.lt.s32.totalorder %s2536_s29, %s2530_s9 }
 0x5b8   : > { %p2533_p12 = pneg %p2532_p8 }
 0x5b9   : > { %p2539_p5 = por %p2538_p1, %p2537_p2 }
 0x5bb   : > { %p2540_p6 = pnand %p2539_p5, %p2533_p12 }
 0x5bd   : > { %2543 = shalt.err (!%p2540_p6)
}
 0x5be   : > { %s2544_s13 = scalar_lea.hbm %s3329_s14, 128  ;;  %s2548_s18 = scalar_lea.hbm %s3397_s6, 512 }
 0x5bf   : > { %p2545_p9 = scmp.ne.s32.totalorder %s3329_s14, %s2544_s13  ;;  %p2549_p11 = scmp.lt.u32.totalorder %s3329_s14, %s3397_s6 }
 0x5c0   : > { %p2550_p0 = scmp.lt.u32.totalorder %s2548_s18, %s2544_s13  ;;  %p2552_p4 = scmp.lt.u32.totalorder %s2544_s13, %s3329_s14 }
 0x5c1   : > { %p2546_p10 = pnand %p2545_p9, %p3541_p7 }
 0x5c2   : > { %p2551_p3 = por %p2550_p0, %p2549_p11 }
 0x5c3   : > { %p2547_p13 = pneg %p2546_p10 }
 0x5c4   : > { %p2553_p8 = por %p2552_p4, %p2551_p3 }
 0x5c6   : > { %p2554_p12 = pnand %p2553_p8, %p2547_p13 }
 0x5c8   : > { %2557 = shalt.err (!%p2554_p12)
}
 0x5c9   : > { %2258 = dma.vmem_to_hbm [thread:$0]  (%p3541_p7), %s1772_s15, 128, %s3329_s14, %s1758_s23  }
 0x5ca   : > { %s2651_s26 = smov [#allocation14]   ;;  %p3542_p1 = scmp.eq.s32.totalorder %s2713_s28, 3 }
 0x5cb   : > { %s1782_s21 = sshll.u32 %s2651_s26, 4  ;;  %s1783_s21 = int_to_ptr.vmem [resolvable:$true] %s1782_s21 }
 0x5cc   : > { %s2558_s22 = scalar_lea.vmem %s1783_s21, 128  ;;  %p2565_p9 = scmp.lt.s32.totalorder %s1783_s21, %s1783_s21 }
 0x5cd   : > { %p2559_p2 = scmp.ne.s32.totalorder %s1783_s21, %s2558_s22  ;;  %p2566_p10 = scmp.lt.s32.totalorder %s2558_s22, %s2558_s22 }
 0x5cf   : > { %p2560_p5 = pnand %p2559_p2, %p3542_p1  ;;  %p2567_p11 = por %p2566_p10, %p2565_p9 }
 0x5d1   : > { %p2561_p6 = pneg %p2560_p5 }
 0x5d3   : > { %p2568_p0 = pnand %p2567_p11, %p2561_p6 }
 0x5d5   : > { %2571 = shalt.err (!%p2568_p0)
}
 0x5d6   : > { %s2572_s11 = scalar_lea.hbm %s3398_s7, 128  ;;  %p3543_p13 = pmov %p3542_p1 }
 0x5d7   : > { %p2573_p7 = scmp.ne.s32.totalorder %s3398_s7, %s2572_s11  ;;  %p2578_p8 = scmp.lt.u32.totalorder %s2572_s11, %s3398_s7 }
 0x5d9   : > { %p2574_p3 = pnand %p2573_p7, %p3543_p13 }
 0x5db   : > { %p2575_p4 = pneg %p2574_p3 }
 0x5dd   : > { %p2580_p12 = pnand %p2578_p8, %p2575_p4 }
 0x5df   : > { %2583 = shalt.err (!%p2580_p12)
}
 0x5e0   : > { %p3544_p2 = pmov %p3542_p1 }
 0x5e2   : > { %2260 = dma.vmem_to_hbm [thread:$0]  (%p3544_p2), %s1783_s21, 128, %s3398_s7, [#allocation15]  }
 0x5e3   : > { %2613 = dma.done.wait (%p3542_p1), [#allocation15], 128   ;;  %p3545_p5 = pmov %p3542_p1 }
 0x5e5   : > { %2615 = vsyncadd (%p3545_p5), [#allocation15], 4294967168 }
 0x5e6 PF: > { %p2296_p6 = scmp.ge.s32.totalorder %s2634_s27, 2  ;;  %s1798_s13 = sand.u32 1, %s2622_s24  }
 0x5e7   : > { %p3546_p9 = scmp.ne.s32.totalorder %s3431_s12, 0  ;;  %s1799_s16 = scalar_lea.sflag [#allocation6], %s1798_s13 }
 0x5e9   : > { %p2281_p10 = pnand %p2296_p6, %p3546_p9 }
 0x5eb   : > { %2617 = dma.done.wait (!%p2281_p10), %s1799_s16, 128  }
 0x5ec   : > { %2619 = vsyncadd (!%p2281_p10), %s1799_s16, 4294967168  ;;  %s3547_s10 = sld [smem:[#allocation21_spill]]  ;;  %s3548_s26 = sld [smem:[#allocation22_spill]] }
 0x5ed   : > { %p22_p11 = scmp.ge.s32.totalorder %s2717_s30, 6   ;;  %s3549_s24 = smov %s2626_s25 }
 0x5ee   : > { %s3551_s27 = smov %s2717_s30 }
 0x5ef   :  { %24 = sbr.rel (!%p22_p11) target bundleno = 9 (0x9), region = 130 }
 0x5f2   : > { %s3550_s25 = smov %s3547_s10 }
 0x5f6   :  { %1804 = vsyncpa [#allocation5], 1 }
 0x5f7   :  { %1806 = vsyncpa [#allocation5 + $0x1], 1 }
 0x5f8   :  { %1807 = vsyncpa [#allocation8], 1 }
 0x5f9   :  { %1808 = vsyncpa [#allocation11], 1 }
 0x5fa   :  { %1809 = vsyncpa [#allocation6], 1 }
 0x5fb   :  { %1811 = vsyncpa [#allocation6 + $0x1], 1 }
 0x5fc   :  { %1812 = vsyncpa [#allocation15], 1 }

</bundles_post_ra>
